<compile_context>
chip_gen: v6e
topology: v6e:2x2x1
jax: 0.10.0
libtpu: 0.0.40
codegen_flags: <defaults>
</compile_context>

<pallas_src>
from types import SimpleNamespace

import jax
import jax.numpy as jnp
from jax import lax
from jax.experimental import pallas as pl
from jax.experimental.pallas import tpu as pltpu


# --------------------------- fused BiLSTM layer ----------------------------

def _bilstm_layer_kernel(xflat_ref, m_ref, wih_ref, bih_ref, whhf_ref, whhb_ref,
                         o_ref, xproj_sc):
    # xflat: [S*B, Din], m: [S, B, 1], wih: [Din, 8H] (fwd cols | bwd cols),
    # bih: [1, 8H], whh_f/whh_b: [H, 4H], out: [S, B, 2H] (fwd half | bwd half)
    S, B, _ = m_ref.shape
    H = whhf_ref.shape[0]

    # Hoisted input projection for both directions + bias (one MXU matmul).
    xproj_sc[...] = (jnp.dot(xflat_ref[...], wih_ref[...],
                             preferred_element_type=jnp.float32)
                     + bih_ref[...])

    whh_f = whhf_ref[...]
    whh_b = whhb_ref[...]

    def cell(gx, h_prev, c_prev, whh, m):
        g = gx + jnp.dot(h_prev, whh, preferred_element_type=jnp.float32)
        i = jax.nn.sigmoid(g[:, 0 * H:1 * H])     # PyTorch gate order i,f,g,o
        f = jax.nn.sigmoid(g[:, 1 * H:2 * H])
        z = jnp.tanh(g[:, 2 * H:3 * H])
        o = jax.nn.sigmoid(g[:, 3 * H:4 * H])
        c_new = f * c_prev + i * z
        h_new = o * jnp.tanh(c_new)
        # packed-sequence semantics: only advance state inside the valid
        # length, emit zeros at padded steps (matches pad_packed_sequence).
        c = m * c_new + (1.0 - m) * c_prev
        h = m * h_new + (1.0 - m) * h_prev
        return h, c, m * h_new

    zeros = jnp.zeros((B, H), jnp.float32)
    hf, cf = zeros, zeros
    hb, cb = zeros, zeros
    for t in range(S):                             # static trip count -> unrolled
        tb = S - 1 - t
        mf = m_ref[t]                              # [B, 1]
        mb = m_ref[tb]
        gxf = xproj_sc[t * B:(t + 1) * B, 0:4 * H]       # forward gates @ t
        gxb = xproj_sc[tb * B:(tb + 1) * B, 4 * H:8 * H]  # backward gates @ S-1-t
        hf, cf, outf = cell(gxf, hf, cf, whh_f, mf)
        hb, cb, outb = cell(gxb, hb, cb, whh_b, mb)
        o_ref[t, :, 0:H] = outf
        o_ref[tb, :, H:2 * H] = outb


def bilstm_layer(x_sbd, m_sb1, wih, bih, whh_f, whh_b):
    # x_sbd: [S, B, Din] time-major; returns [S, B, 2H]
    S, B, Din = x_sbd.shape
    H = whh_f.shape[0]
    x_flat = x_sbd.reshape(S * B, Din)             # free row-major reshape
    return pl.pallas_call(
        _bilstm_layer_kernel,
        out_shape=jax.ShapeDtypeStruct((S, B, 2 * H), jnp.float32),
        grid=(1,),
        in_specs=[pl.BlockSpec((S * B, Din), lambda i: (0, 0)),
                  pl.BlockSpec((S, B, 1), lambda i: (0, 0, 0)),
                  pl.BlockSpec((Din, 8 * H), lambda i: (0, 0)),
                  pl.BlockSpec((1, 8 * H), lambda i: (0, 0)),
                  pl.BlockSpec((H, 4 * H), lambda i: (0, 0)),
                  pl.BlockSpec((H, 4 * H), lambda i: (0, 0))],
        out_specs=pl.BlockSpec((S, B, 2 * H), lambda i: (0, 0, 0)),
        scratch_shapes=[pltpu.VMEM((S * B, 8 * H), jnp.float32)],
        compiler_params=pltpu.CompilerParams(dimension_semantics=("arbitrary",)),
    )(x_flat, m_sb1, wih, bih, whh_f, whh_b)


# ------------------- fused head: MLPs + biaffines + mask --------------------

def _head_kernel(x_ref, m_ref, wmlp_ref, bmlp_ref, arcw_ref, relw_ref,
                 sarc_ref, srel_ref):
    # x: [1, S, 2H], m: [1, 1, S] (1.0 where valid), wmlp: [2H, 2A+2R],
    # bmlp: [1, 2A+2R], arcw: [A+1, A], relw: [O, R+1, R+1]
    A = arcw_ref.shape[1]
    Rp1 = relw_ref.shape[1]
    R = Rp1 - 1
    O = relw_ref.shape[0]

    x = x_ref[0]                                               # [S, 2H]

    # One fused matmul for the 4 MLPs, then LeakyReLU(0.1).
    h = (jnp.dot(x, wmlp_ref[...], preferred_element_type=jnp.float32)
         + bmlp_ref[...])
    h = jnp.where(h >= 0.0, h, 0.1 * h)
    arc_h = h[:, 0:A]
    arc_d = h[:, A:2 * A]
    rel_h = h[:, 2 * A:2 * A + R]
    rel_d = h[:, 2 * A + R:2 * A + 2 * R]

    # Arc biaffine (bias_x=True, bias_y=False), bias folded in (no ones concat).
    t = (jnp.dot(arc_d, arcw_ref[0:A, :], preferred_element_type=jnp.float32)
         + arcw_ref[A:A + 1, :])
    s_arc = lax.dot_general(t, arc_h, (((1,), (1,)), ((), ())),
                            preferred_element_type=jnp.float32)     # [S, S]
    m = m_ref[0]                                                    # [1, S]
    # s_arc.masked_fill_(~mask.unsqueeze(1), -1e9) fused in-kernel.
    sarc_ref[0] = jnp.where(m > 0.5, s_arc, jnp.float32(-1e9))

    # Rel biaffine (bias_x=True, bias_y=True), all relation heads in one call.
    for o in range(O):
        w_main = relw_ref[o, 0:R, :]                                # [R, R+1]
        w_bias = relw_ref[o, R:R + 1, :]                            # [1, R+1]
        t = (jnp.dot(rel_d, w_main, preferred_element_type=jnp.float32)
             + w_bias)                                              # [S, R+1]
        s = (lax.dot_general(t[:, 0:R], rel_h, (((1,), (1,)), ((), ())),
                             preferred_element_type=jnp.float32)
             + t[:, R:R + 1])                                       # [S, S]
        srel_ref[0, o] = s


def parser_head(x_bsd, mask_b1s, w_mlp, b_mlp, arc_w, rel_w):
    B, S, D = x_bsd.shape
    A = arc_w.shape[1]
    O, Rp1, _ = rel_w.shape
    Dtot = w_mlp.shape[1]
    return pl.pallas_call(
        _head_kernel,
        out_shape=(jax.ShapeDtypeStruct((B, S, S), jnp.float32),
                   jax.ShapeDtypeStruct((B, O, S, S), jnp.float32)),
        grid=(B,),
        in_specs=[pl.BlockSpec((1, S, D), lambda b: (b, 0, 0)),
                  pl.BlockSpec((1, 1, S), lambda b: (b, 0, 0)),
                  pl.BlockSpec((D, Dtot), lambda b: (0, 0)),
                  pl.BlockSpec((1, Dtot), lambda b: (0, 0)),
                  pl.BlockSpec((A + 1, A), lambda b: (0, 0)),
                  pl.BlockSpec((O, Rp1, Rp1), lambda b: (0, 0, 0))],
        out_specs=(pl.BlockSpec((1, S, S), lambda b: (b, 0, 0)),
                   pl.BlockSpec((1, O, S, S), lambda b: (b, 0, 0, 0))),
        compiler_params=pltpu.CompilerParams(dimension_semantics=("parallel",)),
    )(x_bsd, mask_b1s, w_mlp, b_mlp, arc_w, rel_w)


# --------------------------- parameters / forward --------------------------

def init_params(args, key):
    ks = iter(jax.random.split(key, 64))

    def nrm(shape, scale=0.1):
        return scale * jax.random.normal(next(ks), shape, jnp.float32)

    H = args.n_lstm_hidden
    A, R = args.n_mlp_arc, args.n_mlp_rel
    p = {
        "word_embed": nrm((args.n_words, args.n_embed)),
        "pos_embed": nrm((args.n_pos_feats, args.n_embed)),
        # Fused MLP weight: columns = [arc_h | arc_d | rel_h | rel_d]
        "mlp_w": nrm((2 * H, 2 * A + 2 * R)),
        "mlp_b": nrm((1, 2 * A + 2 * R)),
        "arc_attn": nrm((A + 1, A)),                       # bias_x only
        "rel_attn": nrm((args.n_rels, R + 1, R + 1)),      # bias_x and bias_y
    }
    lstm = []
    din = args.n_embed * (args.use_char + args.use_bert + args.use_pos + 1)
    for _ in range(args.n_lstm_layers):
        lstm.append(dict(
            wih=nrm((din, 8 * H)),      # cols [:4H]=forward, [4H:]=backward
            bih=nrm((1, 8 * H)),
            whh_f=nrm((H, 4 * H)),
            whh_b=nrm((H, 4 * H)),
        ))
        din = 2 * H
    p["lstm"] = lstm
    return p


def model_forward(params, args, words, pos_feats):
    B, S = words.shape
    mask = words != args.pad_index                                   # [B, S]
    ext_words = jnp.where(words >= args.n_words, args.unk_index, words)

    word_embed = jnp.take(params["word_embed"], ext_words, axis=0)   # [B,S,E]
    pos_embed = jnp.take(params["pos_embed"], pos_feats, axis=0)     # [B,S,E]
    # embed_dropout (IndependentDropout): identity in eval mode
    embed = jnp.concatenate([word_embed, pos_embed], axis=-1)        # [B,S,2E]

    # BiLSTM over packed sequence == masked recurrence over time-major input
    x = jnp.transpose(embed, (1, 0, 2))                              # [S,B,2E]
    m = jnp.transpose(mask, (1, 0))[:, :, None].astype(jnp.float32)  # [S,B,1]
    for layer in params["lstm"]:
        x = bilstm_layer(x, m, layer["wih"], layer["bih"],
                         layer["whh_f"], layer["whh_b"])             # [S,B,2H]
    x = jnp.transpose(x, (1, 0, 2))                                  # [B,S,2H]
    # lstm_dropout (SharedDropout): identity in eval mode

    mask_b1s = mask[:, None, :].astype(jnp.float32)                  # [B,1,S]
    s_arc, s_rel_bo = parser_head(x, mask_b1s, params["mlp_w"], params["mlp_b"],
                                  params["arc_attn"], params["rel_attn"])
    # [B,O,S,S] -> [B,S,S,O]; tiny XLA transpose of the final rel scores.
    s_rel = jnp.transpose(s_rel_bo, (0, 2, 3, 1))
    # TODO(synk): CHAR_LSTM / BertEmbedding / second-order (use_second_order)
    # branches are disabled by this args configuration and not implemented.
    return s_arc, s_rel


# ---------------------------------- main -----------------------------------

if __name__ == "__main__":
    args = SimpleNamespace(
        n_words=100, n_embed=32, n_pos_feats=20,
        use_char=False, use_bert=False, use_pos=True,
        embed_dropout=0.33,
        n_lstm_hidden=32, n_lstm_layers=2, lstm_dropout=0.33,
        n_mlp_arc=64, n_mlp_rel=32, mlp_dropout=0.33,
        n_rels=8,
        use_second_order=False, binary=False,
        pad_index=0, unk_index=1,
    )

    key = jax.random.PRNGKey(0)
    kp, kw, kpos = jax.random.split(key, 3)
    params = init_params(args, kp)

    B, S = 2, 8
    lens = jnp.array([8, 5])
    pos_idx = jnp.arange(S)[None, :]
    words = jax.random.randint(kw, (B, S), 2, args.n_words, dtype=jnp.int32)
    words = jnp.where(pos_idx < lens[:, None], words, args.pad_index)
    pos_feats = jax.random.randint(kpos, (B, S), 0, args.n_pos_feats, dtype=jnp.int32)
    pos_feats = jnp.where(pos_idx < lens[:, None], pos_feats, 0)

    s_arc, s_rel = model_forward(params, args, words, pos_feats)
    jax.block_until_ready((s_arc, s_rel))
    assert s_arc.shape == (B, S, S)
    assert s_rel.shape == (B, S, S, args.n_rels)
    print("KERNEL_OK")
</pallas_src>

<mosaic_0001>
module attributes {stable_mosaic.version = 11 : i64} {
  func.func @_bilstm_layer_kernel(%arg0: i32, %arg1: memref<16x64xf32, #tpu.memory_space<vmem>>, %arg2: memref<8x2x1xf32, #tpu.memory_space<vmem>>, %arg3: memref<64x256xf32, #tpu.memory_space<vmem>>, %arg4: memref<1x256xf32, #tpu.memory_space<vmem>>, %arg5: memref<32x128xf32, #tpu.memory_space<vmem>>, %arg6: memref<32x128xf32, #tpu.memory_space<vmem>>, %arg7: memref<8x2x64xf32, #tpu.memory_space<vmem>>, %arg8: memref<16x256xf32, #tpu.memory_space<vmem>>) attributes {dimension_semantics = [#tpu.dimension_semantics<arbitrary>], iteration_bounds = array<i64: 1>, scalar_prefetch = 0 : i64, scratch_operands = 1 : i64, tpu.core_type = #tpu.core_type<tc>, window_params = [{pipeline_mode = #tpu.pipeline_mode<synchronous>, transform_indices = @transform_0, window_bounds = array<i64: 16, 64>}, {pipeline_mode = #tpu.pipeline_mode<synchronous>, transform_indices = @transform_1, window_bounds = array<i64: 8, 2, 1>}, {pipeline_mode = #tpu.pipeline_mode<synchronous>, transform_indices = @transform_2, window_bounds = array<i64: 64, 256>}, {pipeline_mode = #tpu.pipeline_mode<synchronous>, transform_indices = @transform_3, window_bounds = array<i64: 1, 256>}, {pipeline_mode = #tpu.pipeline_mode<synchronous>, transform_indices = @transform_4, window_bounds = array<i64: 32, 128>}, {pipeline_mode = #tpu.pipeline_mode<synchronous>, transform_indices = @transform_5, window_bounds = array<i64: 32, 128>}, {pipeline_mode = #tpu.pipeline_mode<synchronous>, transform_indices = @transform_6, window_bounds = array<i64: 8, 2, 64>}]} {
    %c0 = arith.constant 0 : index
    %c0_0 = arith.constant 0 : index
    %0 = vector.load %arg1[%c0, %c0_0] : memref<16x64xf32, #tpu.memory_space<vmem>>, vector<16x64xf32>
    %c0_1 = arith.constant 0 : index
    %c0_2 = arith.constant 0 : index
    %1 = vector.load %arg3[%c0_1, %c0_2] : memref<64x256xf32, #tpu.memory_space<vmem>>, vector<64x256xf32>
    %cst = arith.constant dense<0.000000e+00> : vector<16x256xf32>
    %2 = tpu.matmul %0, %1, %cst {dimension_numbers = #tpu.dot_dimension_numbers<[1], [0], [0], [1], [0, 0, 1, 1], [], []>} : vector<16x64xf32>, vector<64x256xf32>, vector<16x256xf32> -> vector<16x256xf32>
    %c0_3 = arith.constant 0 : index
    %c0_4 = arith.constant 0 : index
    %3 = vector.load %arg4[%c0_3, %c0_4] : memref<1x256xf32, #tpu.memory_space<vmem>>, vector<1x256xf32>
    %4 = vector.broadcast %3 : vector<1x256xf32> to vector<16x256xf32>
    %5 = arith.addf %2, %4 : vector<16x256xf32>
    %c0_5 = arith.constant 0 : index
    %c0_6 = arith.constant 0 : index
    %6 = vector.load %arg8[%c0_5, %c0_6] : memref<16x256xf32, #tpu.memory_space<vmem>>, vector<16x256xf32>
    tpu.vector_store %arg8[%c0_5, %c0_6], %5 {strides = array<i32>} : memref<16x256xf32, #tpu.memory_space<vmem>>, vector<16x256xf32>,
    %c0_7 = arith.constant 0 : index
    %c0_8 = arith.constant 0 : index
    %7 = vector.load %arg5[%c0_7, %c0_8] : memref<32x128xf32, #tpu.memory_space<vmem>>, vector<32x128xf32>
    %c0_9 = arith.constant 0 : index
    %c0_10 = arith.constant 0 : index
    %8 = vector.load %arg6[%c0_9, %c0_10] : memref<32x128xf32, #tpu.memory_space<vmem>>, vector<32x128xf32>
    %cst_11 = arith.constant 0.000000e+00 : f32
    %9 = vector.broadcast %cst_11 : f32 to vector<2x32xf32>
    %c0_12 = arith.constant 0 : index
    %c0_13 = arith.constant 0 : index
    %c0_14 = arith.constant 0 : index
    %10 = vector.load %arg2[%c0_12, %c0_13, %c0_14] : memref<8x2x1xf32, #tpu.memory_space<vmem>>, vector<1x2x1xf32>
    %11 = vector.shape_cast %10 : vector<1x2x1xf32> to vector<2x1xf32>
    %c7 = arith.constant 7 : index
    %c0_15 = arith.constant 0 : index
    %c0_16 = arith.constant 0 : index
    %12 = vector.load %arg2[%c7, %c0_15, %c0_16] : memref<8x2x1xf32, #tpu.memory_space<vmem>>, vector<1x2x1xf32>
    %13 = vector.shape_cast %12 : vector<1x2x1xf32> to vector<2x1xf32>
    %c0_17 = arith.constant 0 : index
    %c0_18 = arith.constant 0 : index
    %14 = vector.load %arg8[%c0_17, %c0_18] : memref<16x256xf32, #tpu.memory_space<vmem>>, vector<2x128xf32>
    %c14 = arith.constant 14 : index
    %c128 = arith.constant 128 : index
    %15 = vector.load %arg8[%c14, %c128] : memref<16x256xf32, #tpu.memory_space<vmem>>, vector<2x128xf32>
    %cst_19 = arith.constant dense<0.000000e+00> : vector<2x128xf32>
    %16 = tpu.matmul %9, %7, %cst_19 {dimension_numbers = #tpu.dot_dimension_numbers<[1], [0], [0], [1], [0, 0, 1, 1], [], []>} : vector<2x32xf32>, vector<32x128xf32>, vector<2x128xf32> -> vector<2x128xf32>
    %17 = arith.addf %14, %16 : vector<2x128xf32>
    %18 = vector.extract_strided_slice %17 {offsets = [0, 0], sizes = [2, 32], strides = [1, 1]} : vector<2x128xf32> to vector<2x32xf32>
    %19 = arith.negf %18 : vector<2x32xf32>
    %20 = math.exp %19 : vector<2x32xf32>
    %cst_20 = arith.constant 1.000000e+00 : f32
    %21 = vector.broadcast %cst_20 : f32 to vector<2x32xf32>
    %22 = arith.addf %21, %20 : vector<2x32xf32>
    %23 = arith.divf %21, %22 : vector<2x32xf32>
    %24 = vector.extract_strided_slice %17 {offsets = [0, 32], sizes = [2, 32], strides = [1, 1]} : vector<2x128xf32> to vector<2x32xf32>
    %25 = arith.negf %24 : vector<2x32xf32>
    %26 = math.exp %25 : vector<2x32xf32>
    %cst_21 = arith.constant 1.000000e+00 : f32
    %27 = vector.broadcast %cst_21 : f32 to vector<2x32xf32>
    %28 = arith.addf %27, %26 : vector<2x32xf32>
    %29 = arith.divf %27, %28 : vector<2x32xf32>
    %30 = vector.extract_strided_slice %17 {offsets = [0, 64], sizes = [2, 32], strides = [1, 1]} : vector<2x128xf32> to vector<2x32xf32>
    %31 = math.tanh %30 : vector<2x32xf32>
    %32 = vector.extract_strided_slice %17 {offsets = [0, 96], sizes = [2, 32], strides = [1, 1]} : vector<2x128xf32> to vector<2x32xf32>
    %33 = arith.negf %32 : vector<2x32xf32>
    %34 = math.exp %33 : vector<2x32xf32>
    %cst_22 = arith.constant 1.000000e+00 : f32
    %35 = vector.broadcast %cst_22 : f32 to vector<2x32xf32>
    %36 = arith.addf %35, %34 : vector<2x32xf32>
    %37 = arith.divf %35, %36 : vector<2x32xf32>
    %38 = arith.mulf %29, %9 : vector<2x32xf32>
    %39 = arith.mulf %23, %31 : vector<2x32xf32>
    %40 = arith.addf %38, %39 : vector<2x32xf32>
    %41 = math.tanh %40 : vector<2x32xf32>
    %42 = arith.mulf %37, %41 : vector<2x32xf32>
    %43 = vector.broadcast %11 : vector<2x1xf32> to vector<2x32xf32>
    %44 = arith.mulf %43, %40 : vector<2x32xf32>
    %cst_23 = arith.constant 1.000000e+00 : f32
    %45 = vector.broadcast %cst_23 : f32 to vector<2x1xf32>
    %46 = arith.subf %45, %11 : vector<2x1xf32>
    %47 = vector.broadcast %46 : vector<2x1xf32> to vector<2x32xf32>
    %48 = arith.mulf %47, %9 : vector<2x32xf32>
    %49 = arith.addf %44, %48 : vector<2x32xf32>
    %50 = vector.broadcast %11 : vector<2x1xf32> to vector<2x32xf32>
    %51 = arith.mulf %50, %42 : vector<2x32xf32>
    %cst_24 = arith.constant 1.000000e+00 : f32
    %52 = vector.broadcast %cst_24 : f32 to vector<2x1xf32>
    %53 = arith.subf %52, %11 : vector<2x1xf32>
    %54 = vector.broadcast %53 : vector<2x1xf32> to vector<2x32xf32>
    %55 = arith.mulf %54, %9 : vector<2x32xf32>
    %56 = arith.addf %51, %55 : vector<2x32xf32>
    %57 = vector.broadcast %11 : vector<2x1xf32> to vector<2x32xf32>
    %58 = arith.mulf %57, %42 : vector<2x32xf32>
    %cst_25 = arith.constant dense<0.000000e+00> : vector<2x128xf32>
    %59 = tpu.matmul %9, %8, %cst_25 {dimension_numbers = #tpu.dot_dimension_numbers<[1], [0], [0], [1], [0, 0, 1, 1], [], []>} : vector<2x32xf32>, vector<32x128xf32>, vector<2x128xf32> -> vector<2x128xf32>
    %60 = arith.addf %15, %59 : vector<2x128xf32>
    %61 = vector.extract_strided_slice %60 {offsets = [0, 0], sizes = [2, 32], strides = [1, 1]} : vector<2x128xf32> to vector<2x32xf32>
    %62 = arith.negf %61 : vector<2x32xf32>
    %63 = math.exp %62 : vector<2x32xf32>
    %cst_26 = arith.constant 1.000000e+00 : f32
    %64 = vector.broadcast %cst_26 : f32 to vector<2x32xf32>
    %65 = arith.addf %64, %63 : vector<2x32xf32>
    %66 = arith.divf %64, %65 : vector<2x32xf32>
    %67 = vector.extract_strided_slice %60 {offsets = [0, 32], sizes = [2, 32], strides = [1, 1]} : vector<2x128xf32> to vector<2x32xf32>
    %68 = arith.negf %67 : vector<2x32xf32>
    %69 = math.exp %68 : vector<2x32xf32>
    %cst_27 = arith.constant 1.000000e+00 : f32
    %70 = vector.broadcast %cst_27 : f32 to vector<2x32xf32>
    %71 = arith.addf %70, %69 : vector<2x32xf32>
    %72 = arith.divf %70, %71 : vector<2x32xf32>
    %73 = vector.extract_strided_slice %60 {offsets = [0, 64], sizes = [2, 32], strides = [1, 1]} : vector<2x128xf32> to vector<2x32xf32>
    %74 = math.tanh %73 : vector<2x32xf32>
    %75 = vector.extract_strided_slice %60 {offsets = [0, 96], sizes = [2, 32], strides = [1, 1]} : vector<2x128xf32> to vector<2x32xf32>
    %76 = arith.negf %75 : vector<2x32xf32>
    %77 = math.exp %76 : vector<2x32xf32>
    %cst_28 = arith.constant 1.000000e+00 : f32
    %78 = vector.broadcast %cst_28 : f32 to vector<2x32xf32>
    %79 = arith.addf %78, %77 : vector<2x32xf32>
    %80 = arith.divf %78, %79 : vector<2x32xf32>
    %81 = arith.mulf %72, %9 : vector<2x32xf32>
    %82 = arith.mulf %66, %74 : vector<2x32xf32>
    %83 = arith.addf %81, %82 : vector<2x32xf32>
    %84 = math.tanh %83 : vector<2x32xf32>
    %85 = arith.mulf %80, %84 : vector<2x32xf32>
    %86 = vector.broadcast %13 : vector<2x1xf32> to vector<2x32xf32>
    %87 = arith.mulf %86, %83 : vector<2x32xf32>
    %cst_29 = arith.constant 1.000000e+00 : f32
    %88 = vector.broadcast %cst_29 : f32 to vector<2x1xf32>
    %89 = arith.subf %88, %13 : vector<2x1xf32>
    %90 = vector.broadcast %89 : vector<2x1xf32> to vector<2x32xf32>
    %91 = arith.mulf %90, %9 : vector<2x32xf32>
    %92 = arith.addf %87, %91 : vector<2x32xf32>
    %93 = vector.broadcast %13 : vector<2x1xf32> to vector<2x32xf32>
    %94 = arith.mulf %93, %85 : vector<2x32xf32>
    %cst_30 = arith.constant 1.000000e+00 : f32
    %95 = vector.broadcast %cst_30 : f32 to vector<2x1xf32>
    %96 = arith.subf %95, %13 : vector<2x1xf32>
    %97 = vector.broadcast %96 : vector<2x1xf32> to vector<2x32xf32>
    %98 = arith.mulf %97, %9 : vector<2x32xf32>
    %99 = arith.addf %94, %98 : vector<2x32xf32>
    %100 = vector.broadcast %13 : vector<2x1xf32> to vector<2x32xf32>
    %101 = arith.mulf %100, %85 : vector<2x32xf32>
    %c0_31 = arith.constant 0 : index
    %c0_32 = arith.constant 0 : index
    %c0_33 = arith.constant 0 : index
    %102 = vector.load %arg7[%c0_31, %c0_32, %c0_33] : memref<8x2x64xf32, #tpu.memory_space<vmem>>, vector<1x2x32xf32>
    %103 = vector.shape_cast %102 : vector<1x2x32xf32> to vector<2x32xf32>
    %104 = vector.shape_cast %58 : vector<2x32xf32> to vector<1x2x32xf32>
    tpu.vector_store %arg7[%c0_31, %c0_32, %c0_33], %104 {strides = array<i32>} : memref<8x2x64xf32, #tpu.memory_space<vmem>>, vector<1x2x32xf32>,
    %c7_34 = arith.constant 7 : index
    %c0_35 = arith.constant 0 : index
    %c32 = arith.constant 32 : index
    %105 = vector.load %arg7[%c7_34, %c0_35, %c32] : memref<8x2x64xf32, #tpu.memory_space<vmem>>, vector<1x2x32xf32>
    %106 = vector.shape_cast %105 : vector<1x2x32xf32> to vector<2x32xf32>
    %107 = vector.shape_cast %101 : vector<2x32xf32> to vector<1x2x32xf32>
    tpu.vector_store %arg7[%c7_34, %c0_35, %c32], %107 {strides = array<i32>} : memref<8x2x64xf32, #tpu.memory_space<vmem>>, vector<1x2x32xf32>,
    %c1 = arith.constant 1 : index
    %c0_36 = arith.constant 0 : index
    %c0_37 = arith.constant 0 : index
    %108 = vector.load %arg2[%c1, %c0_36, %c0_37] : memref<8x2x1xf32, #tpu.memory_space<vmem>>, vector<1x2x1xf32>
    %109 = vector.shape_cast %108 : vector<1x2x1xf32> to vector<2x1xf32>
    %c6 = arith.constant 6 : index
    %c0_38 = arith.constant 0 : index
    %c0_39 = arith.constant 0 : index
    %110 = vector.load %arg2[%c6, %c0_38, %c0_39] : memref<8x2x1xf32, #tpu.memory_space<vmem>>, vector<1x2x1xf32>
    %111 = vector.shape_cast %110 : vector<1x2x1xf32> to vector<2x1xf32>
    %c2 = arith.constant 2 : index
    %c0_40 = arith.constant 0 : index
    %112 = vector.load %arg8[%c2, %c0_40] : memref<16x256xf32, #tpu.memory_space<vmem>>, vector<2x128xf32>
    %c12 = arith.constant 12 : index
    %c128_41 = arith.constant 128 : index
    %113 = vector.load %arg8[%c12, %c128_41] : memref<16x256xf32, #tpu.memory_space<vmem>>, vector<2x128xf32>
    %cst_42 = arith.constant dense<0.000000e+00> : vector<2x128xf32>
    %114 = tpu.matmul %56, %7, %cst_42 {dimension_numbers = #tpu.dot_dimension_numbers<[1], [0], [0], [1], [0, 0, 1, 1], [], []>} : vector<2x32xf32>, vector<32x128xf32>, vector<2x128xf32> -> vector<2x128xf32>
    %115 = arith.addf %112, %114 : vector<2x128xf32>
    %116 = vector.extract_strided_slice %115 {offsets = [0, 0], sizes = [2, 32], strides = [1, 1]} : vector<2x128xf32> to vector<2x32xf32>
    %117 = arith.negf %116 : vector<2x32xf32>
    %118 = math.exp %117 : vector<2x32xf32>
    %cst_43 = arith.constant 1.000000e+00 : f32
    %119 = vector.broadcast %cst_43 : f32 to vector<2x32xf32>
    %120 = arith.addf %119, %118 : vector<2x32xf32>
    %121 = arith.divf %119, %120 : vector<2x32xf32>
    %122 = vector.extract_strided_slice %115 {offsets = [0, 32], sizes = [2, 32], strides = [1, 1]} : vector<2x128xf32> to vector<2x32xf32>
    %123 = arith.negf %122 : vector<2x32xf32>
    %124 = math.exp %123 : vector<2x32xf32>
    %cst_44 = arith.constant 1.000000e+00 : f32
    %125 = vector.broadcast %cst_44 : f32 to vector<2x32xf32>
    %126 = arith.addf %125, %124 : vector<2x32xf32>
    %127 = arith.divf %125, %126 : vector<2x32xf32>
    %128 = vector.extract_strided_slice %115 {offsets = [0, 64], sizes = [2, 32], strides = [1, 1]} : vector<2x128xf32> to vector<2x32xf32>
    %129 = math.tanh %128 : vector<2x32xf32>
    %130 = vector.extract_strided_slice %115 {offsets = [0, 96], sizes = [2, 32], strides = [1, 1]} : vector<2x128xf32> to vector<2x32xf32>
    %131 = arith.negf %130 : vector<2x32xf32>
    %132 = math.exp %131 : vector<2x32xf32>
    %cst_45 = arith.constant 1.000000e+00 : f32
    %133 = vector.broadcast %cst_45 : f32 to vector<2x32xf32>
    %134 = arith.addf %133, %132 : vector<2x32xf32>
    %135 = arith.divf %133, %134 : vector<2x32xf32>
    %136 = arith.mulf %127, %49 : vector<2x32xf32>
    %137 = arith.mulf %121, %129 : vector<2x32xf32>
    %138 = arith.addf %136, %137 : vector<2x32xf32>
    %139 = math.tanh %138 : vector<2x32xf32>
    %140 = arith.mulf %135, %139 : vector<2x32xf32>
    %141 = vector.broadcast %109 : vector<2x1xf32> to vector<2x32xf32>
    %142 = arith.mulf %141, %138 : vector<2x32xf32>
    %cst_46 = arith.constant 1.000000e+00 : f32
    %143 = vector.broadcast %cst_46 : f32 to vector<2x1xf32>
    %144 = arith.subf %143, %109 : vector<2x1xf32>
    %145 = vector.broadcast %144 : vector<2x1xf32> to vector<2x32xf32>
    %146 = arith.mulf %145, %49 : vector<2x32xf32>
    %147 = arith.addf %142, %146 : vector<2x32xf32>
    %148 = vector.broadcast %109 : vector<2x1xf32> to vector<2x32xf32>
    %149 = arith.mulf %148, %140 : vector<2x32xf32>
    %cst_47 = arith.constant 1.000000e+00 : f32
    %150 = vector.broadcast %cst_47 : f32 to vector<2x1xf32>
    %151 = arith.subf %150, %109 : vector<2x1xf32>
    %152 = vector.broadcast %151 : vector<2x1xf32> to vector<2x32xf32>
    %153 = arith.mulf %152, %56 : vector<2x32xf32>
    %154 = arith.addf %149, %153 : vector<2x32xf32>
    %155 = vector.broadcast %109 : vector<2x1xf32> to vector<2x32xf32>
    %156 = arith.mulf %155, %140 : vector<2x32xf32>
    %cst_48 = arith.constant dense<0.000000e+00> : vector<2x128xf32>
    %157 = tpu.matmul %99, %8, %cst_48 {dimension_numbers = #tpu.dot_dimension_numbers<[1], [0], [0], [1], [0, 0, 1, 1], [], []>} : vector<2x32xf32>, vector<32x128xf32>, vector<2x128xf32> -> vector<2x128xf32>
    %158 = arith.addf %113, %157 : vector<2x128xf32>
    %159 = vector.extract_strided_slice %158 {offsets = [0, 0], sizes = [2, 32], strides = [1, 1]} : vector<2x128xf32> to vector<2x32xf32>
    %160 = arith.negf %159 : vector<2x32xf32>
    %161 = math.exp %160 : vector<2x32xf32>
    %cst_49 = arith.constant 1.000000e+00 : f32
    %162 = vector.broadcast %cst_49 : f32 to vector<2x32xf32>
    %163 = arith.addf %162, %161 : vector<2x32xf32>
    %164 = arith.divf %162, %163 : vector<2x32xf32>
    %165 = vector.extract_strided_slice %158 {offsets = [0, 32], sizes = [2, 32], strides = [1, 1]} : vector<2x128xf32> to vector<2x32xf32>
    %166 = arith.negf %165 : vector<2x32xf32>
    %167 = math.exp %166 : vector<2x32xf32>
    %cst_50 = arith.constant 1.000000e+00 : f32
    %168 = vector.broadcast %cst_50 : f32 to vector<2x32xf32>
    %169 = arith.addf %168, %167 : vector<2x32xf32>
    %170 = arith.divf %168, %169 : vector<2x32xf32>
    %171 = vector.extract_strided_slice %158 {offsets = [0, 64], sizes = [2, 32], strides = [1, 1]} : vector<2x128xf32> to vector<2x32xf32>
    %172 = math.tanh %171 : vector<2x32xf32>
    %173 = vector.extract_strided_slice %158 {offsets = [0, 96], sizes = [2, 32], strides = [1, 1]} : vector<2x128xf32> to vector<2x32xf32>
    %174 = arith.negf %173 : vector<2x32xf32>
    %175 = math.exp %174 : vector<2x32xf32>
    %cst_51 = arith.constant 1.000000e+00 : f32
    %176 = vector.broadcast %cst_51 : f32 to vector<2x32xf32>
    %177 = arith.addf %176, %175 : vector<2x32xf32>
    %178 = arith.divf %176, %177 : vector<2x32xf32>
    %179 = arith.mulf %170, %92 : vector<2x32xf32>
    %180 = arith.mulf %164, %172 : vector<2x32xf32>
    %181 = arith.addf %179, %180 : vector<2x32xf32>
    %182 = math.tanh %181 : vector<2x32xf32>
    %183 = arith.mulf %178, %182 : vector<2x32xf32>
    %184 = vector.broadcast %111 : vector<2x1xf32> to vector<2x32xf32>
    %185 = arith.mulf %184, %181 : vector<2x32xf32>
    %cst_52 = arith.constant 1.000000e+00 : f32
    %186 = vector.broadcast %cst_52 : f32 to vector<2x1xf32>
    %187 = arith.subf %186, %111 : vector<2x1xf32>
    %188 = vector.broadcast %187 : vector<2x1xf32> to vector<2x32xf32>
    %189 = arith.mulf %188, %92 : vector<2x32xf32>
    %190 = arith.addf %185, %189 : vector<2x32xf32>
    %191 = vector.broadcast %111 : vector<2x1xf32> to vector<2x32xf32>
    %192 = arith.mulf %191, %183 : vector<2x32xf32>
    %cst_53 = arith.constant 1.000000e+00 : f32
    %193 = vector.broadcast %cst_53 : f32 to vector<2x1xf32>
    %194 = arith.subf %193, %111 : vector<2x1xf32>
    %195 = vector.broadcast %194 : vector<2x1xf32> to vector<2x32xf32>
    %196 = arith.mulf %195, %99 : vector<2x32xf32>
    %197 = arith.addf %192, %196 : vector<2x32xf32>
    %198 = vector.broadcast %111 : vector<2x1xf32> to vector<2x32xf32>
    %199 = arith.mulf %198, %183 : vector<2x32xf32>
    %c1_54 = arith.constant 1 : index
    %c0_55 = arith.constant 0 : index
    %c0_56 = arith.constant 0 : index
    %200 = vector.load %arg7[%c1_54, %c0_55, %c0_56] : memref<8x2x64xf32, #tpu.memory_space<vmem>>, vector<1x2x32xf32>
    %201 = vector.shape_cast %200 : vector<1x2x32xf32> to vector<2x32xf32>
    %202 = vector.shape_cast %156 : vector<2x32xf32> to vector<1x2x32xf32>
    tpu.vector_store %arg7[%c1_54, %c0_55, %c0_56], %202 {strides = array<i32>} : memref<8x2x64xf32, #tpu.memory_space<vmem>>, vector<1x2x32xf32>,
    %c6_57 = arith.constant 6 : index
    %c0_58 = arith.constant 0 : index
    %c32_59 = arith.constant 32 : index
    %203 = vector.load %arg7[%c6_57, %c0_58, %c32_59] : memref<8x2x64xf32, #tpu.memory_space<vmem>>, vector<1x2x32xf32>
    %204 = vector.shape_cast %203 : vector<1x2x32xf32> to vector<2x32xf32>
    %205 = vector.shape_cast %199 : vector<2x32xf32> to vector<1x2x32xf32>
    tpu.vector_store %arg7[%c6_57, %c0_58, %c32_59], %205 {strides = array<i32>} : memref<8x2x64xf32, #tpu.memory_space<vmem>>, vector<1x2x32xf32>,
    %c2_60 = arith.constant 2 : index
    %c0_61 = arith.constant 0 : index
    %c0_62 = arith.constant 0 : index
    %206 = vector.load %arg2[%c2_60, %c0_61, %c0_62] : memref<8x2x1xf32, #tpu.memory_space<vmem>>, vector<1x2x1xf32>
    %207 = vector.shape_cast %206 : vector<1x2x1xf32> to vector<2x1xf32>
    %c5 = arith.constant 5 : index
    %c0_63 = arith.constant 0 : index
    %c0_64 = arith.constant 0 : index
    %208 = vector.load %arg2[%c5, %c0_63, %c0_64] : memref<8x2x1xf32, #tpu.memory_space<vmem>>, vector<1x2x1xf32>
    %209 = vector.shape_cast %208 : vector<1x2x1xf32> to vector<2x1xf32>
    %c4 = arith.constant 4 : index
    %c0_65 = arith.constant 0 : index
    %210 = vector.load %arg8[%c4, %c0_65] : memref<16x256xf32, #tpu.memory_space<vmem>>, vector<2x128xf32>
    %c10 = arith.constant 10 : index
    %c128_66 = arith.constant 128 : index
    %211 = vector.load %arg8[%c10, %c128_66] : memref<16x256xf32, #tpu.memory_space<vmem>>, vector<2x128xf32>
    %cst_67 = arith.constant dense<0.000000e+00> : vector<2x128xf32>
    %212 = tpu.matmul %154, %7, %cst_67 {dimension_numbers = #tpu.dot_dimension_numbers<[1], [0], [0], [1], [0, 0, 1, 1], [], []>} : vector<2x32xf32>, vector<32x128xf32>, vector<2x128xf32> -> vector<2x128xf32>
    %213 = arith.addf %210, %212 : vector<2x128xf32>
    %214 = vector.extract_strided_slice %213 {offsets = [0, 0], sizes = [2, 32], strides = [1, 1]} : vector<2x128xf32> to vector<2x32xf32>
    %215 = arith.negf %214 : vector<2x32xf32>
    %216 = math.exp %215 : vector<2x32xf32>
    %cst_68 = arith.constant 1.000000e+00 : f32
    %217 = vector.broadcast %cst_68 : f32 to vector<2x32xf32>
    %218 = arith.addf %217, %216 : vector<2x32xf32>
    %219 = arith.divf %217, %218 : vector<2x32xf32>
    %220 = vector.extract_strided_slice %213 {offsets = [0, 32], sizes = [2, 32], strides = [1, 1]} : vector<2x128xf32> to vector<2x32xf32>
    %221 = arith.negf %220 : vector<2x32xf32>
    %222 = math.exp %221 : vector<2x32xf32>
    %cst_69 = arith.constant 1.000000e+00 : f32
    %223 = vector.broadcast %cst_69 : f32 to vector<2x32xf32>
    %224 = arith.addf %223, %222 : vector<2x32xf32>
    %225 = arith.divf %223, %224 : vector<2x32xf32>
    %226 = vector.extract_strided_slice %213 {offsets = [0, 64], sizes = [2, 32], strides = [1, 1]} : vector<2x128xf32> to vector<2x32xf32>
    %227 = math.tanh %226 : vector<2x32xf32>
    %228 = vector.extract_strided_slice %213 {offsets = [0, 96], sizes = [2, 32], strides = [1, 1]} : vector<2x128xf32> to vector<2x32xf32>
    %229 = arith.negf %228 : vector<2x32xf32>
    %230 = math.exp %229 : vector<2x32xf32>
    %cst_70 = arith.constant 1.000000e+00 : f32
    %231 = vector.broadcast %cst_70 : f32 to vector<2x32xf32>
    %232 = arith.addf %231, %230 : vector<2x32xf32>
    %233 = arith.divf %231, %232 : vector<2x32xf32>
    %234 = arith.mulf %225, %147 : vector<2x32xf32>
    %235 = arith.mulf %219, %227 : vector<2x32xf32>
    %236 = arith.addf %234, %235 : vector<2x32xf32>
    %237 = math.tanh %236 : vector<2x32xf32>
    %238 = arith.mulf %233, %237 : vector<2x32xf32>
    %239 = vector.broadcast %207 : vector<2x1xf32> to vector<2x32xf32>
    %240 = arith.mulf %239, %236 : vector<2x32xf32>
    %cst_71 = arith.constant 1.000000e+00 : f32
    %241 = vector.broadcast %cst_71 : f32 to vector<2x1xf32>
    %242 = arith.subf %241, %207 : vector<2x1xf32>
    %243 = vector.broadcast %242 : vector<2x1xf32> to vector<2x32xf32>
    %244 = arith.mulf %243, %147 : vector<2x32xf32>
    %245 = arith.addf %240, %244 : vector<2x32xf32>
    %246 = vector.broadcast %207 : vector<2x1xf32> to vector<2x32xf32>
    %247 = arith.mulf %246, %238 : vector<2x32xf32>
    %cst_72 = arith.constant 1.000000e+00 : f32
    %248 = vector.broadcast %cst_72 : f32 to vector<2x1xf32>
    %249 = arith.subf %248, %207 : vector<2x1xf32>
    %250 = vector.broadcast %249 : vector<2x1xf32> to vector<2x32xf32>
    %251 = arith.mulf %250, %154 : vector<2x32xf32>
    %252 = arith.addf %247, %251 : vector<2x32xf32>
    %253 = vector.broadcast %207 : vector<2x1xf32> to vector<2x32xf32>
    %254 = arith.mulf %253, %238 : vector<2x32xf32>
    %cst_73 = arith.constant dense<0.000000e+00> : vector<2x128xf32>
    %255 = tpu.matmul %197, %8, %cst_73 {dimension_numbers = #tpu.dot_dimension_numbers<[1], [0], [0], [1], [0, 0, 1, 1], [], []>} : vector<2x32xf32>, vector<32x128xf32>, vector<2x128xf32> -> vector<2x128xf32>
    %256 = arith.addf %211, %255 : vector<2x128xf32>
    %257 = vector.extract_strided_slice %256 {offsets = [0, 0], sizes = [2, 32], strides = [1, 1]} : vector<2x128xf32> to vector<2x32xf32>
    %258 = arith.negf %257 : vector<2x32xf32>
    %259 = math.exp %258 : vector<2x32xf32>
    %cst_74 = arith.constant 1.000000e+00 : f32
    %260 = vector.broadcast %cst_74 : f32 to vector<2x32xf32>
    %261 = arith.addf %260, %259 : vector<2x32xf32>
    %262 = arith.divf %260, %261 : vector<2x32xf32>
    %263 = vector.extract_strided_slice %256 {offsets = [0, 32], sizes = [2, 32], strides = [1, 1]} : vector<2x128xf32> to vector<2x32xf32>
    %264 = arith.negf %263 : vector<2x32xf32>
    %265 = math.exp %264 : vector<2x32xf32>
    %cst_75 = arith.constant 1.000000e+00 : f32
    %266 = vector.broadcast %cst_75 : f32 to vector<2x32xf32>
    %267 = arith.addf %266, %265 : vector<2x32xf32>
    %268 = arith.divf %266, %267 : vector<2x32xf32>
    %269 = vector.extract_strided_slice %256 {offsets = [0, 64], sizes = [2, 32], strides = [1, 1]} : vector<2x128xf32> to vector<2x32xf32>
    %270 = math.tanh %269 : vector<2x32xf32>
    %271 = vector.extract_strided_slice %256 {offsets = [0, 96], sizes = [2, 32], strides = [1, 1]} : vector<2x128xf32> to vector<2x32xf32>
    %272 = arith.negf %271 : vector<2x32xf32>
    %273 = math.exp %272 : vector<2x32xf32>
    %cst_76 = arith.constant 1.000000e+00 : f32
    %274 = vector.broadcast %cst_76 : f32 to vector<2x32xf32>
    %275 = arith.addf %274, %273 : vector<2x32xf32>
    %276 = arith.divf %274, %275 : vector<2x32xf32>
    %277 = arith.mulf %268, %190 : vector<2x32xf32>
    %278 = arith.mulf %262, %270 : vector<2x32xf32>
    %279 = arith.addf %277, %278 : vector<2x32xf32>
    %280 = math.tanh %279 : vector<2x32xf32>
    %281 = arith.mulf %276, %280 : vector<2x32xf32>
    %282 = vector.broadcast %209 : vector<2x1xf32> to vector<2x32xf32>
    %283 = arith.mulf %282, %279 : vector<2x32xf32>
    %cst_77 = arith.constant 1.000000e+00 : f32
    %284 = vector.broadcast %cst_77 : f32 to vector<2x1xf32>
    %285 = arith.subf %284, %209 : vector<2x1xf32>
    %286 = vector.broadcast %285 : vector<2x1xf32> to vector<2x32xf32>
    %287 = arith.mulf %286, %190 : vector<2x32xf32>
    %288 = arith.addf %283, %287 : vector<2x32xf32>
    %289 = vector.broadcast %209 : vector<2x1xf32> to vector<2x32xf32>
    %290 = arith.mulf %289, %281 : vector<2x32xf32>
    %cst_78 = arith.constant 1.000000e+00 : f32
    %291 = vector.broadcast %cst_78 : f32 to vector<2x1xf32>
    %292 = arith.subf %291, %209 : vector<2x1xf32>
    %293 = vector.broadcast %292 : vector<2x1xf32> to vector<2x32xf32>
    %294 = arith.mulf %293, %197 : vector<2x32xf32>
    %295 = arith.addf %290, %294 : vector<2x32xf32>
    %296 = vector.broadcast %209 : vector<2x1xf32> to vector<2x32xf32>
    %297 = arith.mulf %296, %281 : vector<2x32xf32>
    %c2_79 = arith.constant 2 : index
    %c0_80 = arith.constant 0 : index
    %c0_81 = arith.constant 0 : index
    %298 = vector.load %arg7[%c2_79, %c0_80, %c0_81] : memref<8x2x64xf32, #tpu.memory_space<vmem>>, vector<1x2x32xf32>
    %299 = vector.shape_cast %298 : vector<1x2x32xf32> to vector<2x32xf32>
    %300 = vector.shape_cast %254 : vector<2x32xf32> to vector<1x2x32xf32>
    tpu.vector_store %arg7[%c2_79, %c0_80, %c0_81], %300 {strides = array<i32>} : memref<8x2x64xf32, #tpu.memory_space<vmem>>, vector<1x2x32xf32>,
    %c5_82 = arith.constant 5 : index
    %c0_83 = arith.constant 0 : index
    %c32_84 = arith.constant 32 : index
    %301 = vector.load %arg7[%c5_82, %c0_83, %c32_84] : memref<8x2x64xf32, #tpu.memory_space<vmem>>, vector<1x2x32xf32>
    %302 = vector.shape_cast %301 : vector<1x2x32xf32> to vector<2x32xf32>
    %303 = vector.shape_cast %297 : vector<2x32xf32> to vector<1x2x32xf32>
    tpu.vector_store %arg7[%c5_82, %c0_83, %c32_84], %303 {strides = array<i32>} : memref<8x2x64xf32, #tpu.memory_space<vmem>>, vector<1x2x32xf32>,
    %c3 = arith.constant 3 : index
    %c0_85 = arith.constant 0 : index
    %c0_86 = arith.constant 0 : index
    %304 = vector.load %arg2[%c3, %c0_85, %c0_86] : memref<8x2x1xf32, #tpu.memory_space<vmem>>, vector<1x2x1xf32>
    %305 = vector.shape_cast %304 : vector<1x2x1xf32> to vector<2x1xf32>
    %c4_87 = arith.constant 4 : index
    %c0_88 = arith.constant 0 : index
    %c0_89 = arith.constant 0 : index
    %306 = vector.load %arg2[%c4_87, %c0_88, %c0_89] : memref<8x2x1xf32, #tpu.memory_space<vmem>>, vector<1x2x1xf32>
    %307 = vector.shape_cast %306 : vector<1x2x1xf32> to vector<2x1xf32>
    %c6_90 = arith.constant 6 : index
    %c0_91 = arith.constant 0 : index
    %308 = vector.load %arg8[%c6_90, %c0_91] : memref<16x256xf32, #tpu.memory_space<vmem>>, vector<2x128xf32>
    %c8 = arith.constant 8 : index
    %c128_92 = arith.constant 128 : index
    %309 = vector.load %arg8[%c8, %c128_92] : memref<16x256xf32, #tpu.memory_space<vmem>>, vector<2x128xf32>
    %cst_93 = arith.constant dense<0.000000e+00> : vector<2x128xf32>
    %310 = tpu.matmul %252, %7, %cst_93 {dimension_numbers = #tpu.dot_dimension_numbers<[1], [0], [0], [1], [0, 0, 1, 1], [], []>} : vector<2x32xf32>, vector<32x128xf32>, vector<2x128xf32> -> vector<2x128xf32>
    %311 = arith.addf %308, %310 : vector<2x128xf32>
    %312 = vector.extract_strided_slice %311 {offsets = [0, 0], sizes = [2, 32], strides = [1, 1]} : vector<2x128xf32> to vector<2x32xf32>
    %313 = arith.negf %312 : vector<2x32xf32>
    %314 = math.exp %313 : vector<2x32xf32>
    %cst_94 = arith.constant 1.000000e+00 : f32
    %315 = vector.broadcast %cst_94 : f32 to vector<2x32xf32>
    %316 = arith.addf %315, %314 : vector<2x32xf32>
    %317 = arith.divf %315, %316 : vector<2x32xf32>
    %318 = vector.extract_strided_slice %311 {offsets = [0, 32], sizes = [2, 32], strides = [1, 1]} : vector<2x128xf32> to vector<2x32xf32>
    %319 = arith.negf %318 : vector<2x32xf32>
    %320 = math.exp %319 : vector<2x32xf32>
    %cst_95 = arith.constant 1.000000e+00 : f32
    %321 = vector.broadcast %cst_95 : f32 to vector<2x32xf32>
    %322 = arith.addf %321, %320 : vector<2x32xf32>
    %323 = arith.divf %321, %322 : vector<2x32xf32>
    %324 = vector.extract_strided_slice %311 {offsets = [0, 64], sizes = [2, 32], strides = [1, 1]} : vector<2x128xf32> to vector<2x32xf32>
    %325 = math.tanh %324 : vector<2x32xf32>
    %326 = vector.extract_strided_slice %311 {offsets = [0, 96], sizes = [2, 32], strides = [1, 1]} : vector<2x128xf32> to vector<2x32xf32>
    %327 = arith.negf %326 : vector<2x32xf32>
    %328 = math.exp %327 : vector<2x32xf32>
    %cst_96 = arith.constant 1.000000e+00 : f32
    %329 = vector.broadcast %cst_96 : f32 to vector<2x32xf32>
    %330 = arith.addf %329, %328 : vector<2x32xf32>
    %331 = arith.divf %329, %330 : vector<2x32xf32>
    %332 = arith.mulf %323, %245 : vector<2x32xf32>
    %333 = arith.mulf %317, %325 : vector<2x32xf32>
    %334 = arith.addf %332, %333 : vector<2x32xf32>
    %335 = math.tanh %334 : vector<2x32xf32>
    %336 = arith.mulf %331, %335 : vector<2x32xf32>
    %337 = vector.broadcast %305 : vector<2x1xf32> to vector<2x32xf32>
    %338 = arith.mulf %337, %334 : vector<2x32xf32>
    %cst_97 = arith.constant 1.000000e+00 : f32
    %339 = vector.broadcast %cst_97 : f32 to vector<2x1xf32>
    %340 = arith.subf %339, %305 : vector<2x1xf32>
    %341 = vector.broadcast %340 : vector<2x1xf32> to vector<2x32xf32>
    %342 = arith.mulf %341, %245 : vector<2x32xf32>
    %343 = arith.addf %338, %342 : vector<2x32xf32>
    %344 = vector.broadcast %305 : vector<2x1xf32> to vector<2x32xf32>
    %345 = arith.mulf %344, %336 : vector<2x32xf32>
    %cst_98 = arith.constant 1.000000e+00 : f32
    %346 = vector.broadcast %cst_98 : f32 to vector<2x1xf32>
    %347 = arith.subf %346, %305 : vector<2x1xf32>
    %348 = vector.broadcast %347 : vector<2x1xf32> to vector<2x32xf32>
    %349 = arith.mulf %348, %252 : vector<2x32xf32>
    %350 = arith.addf %345, %349 : vector<2x32xf32>
    %351 = vector.broadcast %305 : vector<2x1xf32> to vector<2x32xf32>
    %352 = arith.mulf %351, %336 : vector<2x32xf32>
    %cst_99 = arith.constant dense<0.000000e+00> : vector<2x128xf32>
    %353 = tpu.matmul %295, %8, %cst_99 {dimension_numbers = #tpu.dot_dimension_numbers<[1], [0], [0], [1], [0, 0, 1, 1], [], []>} : vector<2x32xf32>, vector<32x128xf32>, vector<2x128xf32> -> vector<2x128xf32>
    %354 = arith.addf %309, %353 : vector<2x128xf32>
    %355 = vector.extract_strided_slice %354 {offsets = [0, 0], sizes = [2, 32], strides = [1, 1]} : vector<2x128xf32> to vector<2x32xf32>
    %356 = arith.negf %355 : vector<2x32xf32>
    %357 = math.exp %356 : vector<2x32xf32>
    %cst_100 = arith.constant 1.000000e+00 : f32
    %358 = vector.broadcast %cst_100 : f32 to vector<2x32xf32>
    %359 = arith.addf %358, %357 : vector<2x32xf32>
    %360 = arith.divf %358, %359 : vector<2x32xf32>
    %361 = vector.extract_strided_slice %354 {offsets = [0, 32], sizes = [2, 32], strides = [1, 1]} : vector<2x128xf32> to vector<2x32xf32>
    %362 = arith.negf %361 : vector<2x32xf32>
    %363 = math.exp %362 : vector<2x32xf32>
    %cst_101 = arith.constant 1.000000e+00 : f32
    %364 = vector.broadcast %cst_101 : f32 to vector<2x32xf32>
    %365 = arith.addf %364, %363 : vector<2x32xf32>
    %366 = arith.divf %364, %365 : vector<2x32xf32>
    %367 = vector.extract_strided_slice %354 {offsets = [0, 64], sizes = [2, 32], strides = [1, 1]} : vector<2x128xf32> to vector<2x32xf32>
    %368 = math.tanh %367 : vector<2x32xf32>
    %369 = vector.extract_strided_slice %354 {offsets = [0, 96], sizes = [2, 32], strides = [1, 1]} : vector<2x128xf32> to vector<2x32xf32>
    %370 = arith.negf %369 : vector<2x32xf32>
    %371 = math.exp %370 : vector<2x32xf32>
    %cst_102 = arith.constant 1.000000e+00 : f32
    %372 = vector.broadcast %cst_102 : f32 to vector<2x32xf32>
    %373 = arith.addf %372, %371 : vector<2x32xf32>
    %374 = arith.divf %372, %373 : vector<2x32xf32>
    %375 = arith.mulf %366, %288 : vector<2x32xf32>
    %376 = arith.mulf %360, %368 : vector<2x32xf32>
    %377 = arith.addf %375, %376 : vector<2x32xf32>
    %378 = math.tanh %377 : vector<2x32xf32>
    %379 = arith.mulf %374, %378 : vector<2x32xf32>
    %380 = vector.broadcast %307 : vector<2x1xf32> to vector<2x32xf32>
    %381 = arith.mulf %380, %377 : vector<2x32xf32>
    %cst_103 = arith.constant 1.000000e+00 : f32
    %382 = vector.broadcast %cst_103 : f32 to vector<2x1xf32>
    %383 = arith.subf %382, %307 : vector<2x1xf32>
    %384 = vector.broadcast %383 : vector<2x1xf32> to vector<2x32xf32>
    %385 = arith.mulf %384, %288 : vector<2x32xf32>
    %386 = arith.addf %381, %385 : vector<2x32xf32>
    %387 = vector.broadcast %307 : vector<2x1xf32> to vector<2x32xf32>
    %388 = arith.mulf %387, %379 : vector<2x32xf32>
    %cst_104 = arith.constant 1.000000e+00 : f32
    %389 = vector.broadcast %cst_104 : f32 to vector<2x1xf32>
    %390 = arith.subf %389, %307 : vector<2x1xf32>
    %391 = vector.broadcast %390 : vector<2x1xf32> to vector<2x32xf32>
    %392 = arith.mulf %391, %295 : vector<2x32xf32>
    %393 = arith.addf %388, %392 : vector<2x32xf32>
    %394 = vector.broadcast %307 : vector<2x1xf32> to vector<2x32xf32>
    %395 = arith.mulf %394, %379 : vector<2x32xf32>
    %c3_105 = arith.constant 3 : index
    %c0_106 = arith.constant 0 : index
    %c0_107 = arith.constant 0 : index
    %396 = vector.load %arg7[%c3_105, %c0_106, %c0_107] : memref<8x2x64xf32, #tpu.memory_space<vmem>>, vector<1x2x32xf32>
    %397 = vector.shape_cast %396 : vector<1x2x32xf32> to vector<2x32xf32>
    %398 = vector.shape_cast %352 : vector<2x32xf32> to vector<1x2x32xf32>
    tpu.vector_store %arg7[%c3_105, %c0_106, %c0_107], %398 {strides = array<i32>} : memref<8x2x64xf32, #tpu.memory_space<vmem>>, vector<1x2x32xf32>,
    %c4_108 = arith.constant 4 : index
    %c0_109 = arith.constant 0 : index
    %c32_110 = arith.constant 32 : index
    %399 = vector.load %arg7[%c4_108, %c0_109, %c32_110] : memref<8x2x64xf32, #tpu.memory_space<vmem>>, vector<1x2x32xf32>
    %400 = vector.shape_cast %399 : vector<1x2x32xf32> to vector<2x32xf32>
    %401 = vector.shape_cast %395 : vector<2x32xf32> to vector<1x2x32xf32>
    tpu.vector_store %arg7[%c4_108, %c0_109, %c32_110], %401 {strides = array<i32>} : memref<8x2x64xf32, #tpu.memory_space<vmem>>, vector<1x2x32xf32>,
    %c4_111 = arith.constant 4 : index
    %c0_112 = arith.constant 0 : index
    %c0_113 = arith.constant 0 : index
    %402 = vector.load %arg2[%c4_111, %c0_112, %c0_113] : memref<8x2x1xf32, #tpu.memory_space<vmem>>, vector<1x2x1xf32>
    %403 = vector.shape_cast %402 : vector<1x2x1xf32> to vector<2x1xf32>
    %c3_114 = arith.constant 3 : index
    %c0_115 = arith.constant 0 : index
    %c0_116 = arith.constant 0 : index
    %404 = vector.load %arg2[%c3_114, %c0_115, %c0_116] : memref<8x2x1xf32, #tpu.memory_space<vmem>>, vector<1x2x1xf32>
    %405 = vector.shape_cast %404 : vector<1x2x1xf32> to vector<2x1xf32>
    %c8_117 = arith.constant 8 : index
    %c0_118 = arith.constant 0 : index
    %406 = vector.load %arg8[%c8_117, %c0_118] : memref<16x256xf32, #tpu.memory_space<vmem>>, vector<2x128xf32>
    %c6_119 = arith.constant 6 : index
    %c128_120 = arith.constant 128 : index
    %407 = vector.load %arg8[%c6_119, %c128_120] : memref<16x256xf32, #tpu.memory_space<vmem>>, vector<2x128xf32>
    %cst_121 = arith.constant dense<0.000000e+00> : vector<2x128xf32>
    %408 = tpu.matmul %350, %7, %cst_121 {dimension_numbers = #tpu.dot_dimension_numbers<[1], [0], [0], [1], [0, 0, 1, 1], [], []>} : vector<2x32xf32>, vector<32x128xf32>, vector<2x128xf32> -> vector<2x128xf32>
    %409 = arith.addf %406, %408 : vector<2x128xf32>
    %410 = vector.extract_strided_slice %409 {offsets = [0, 0], sizes = [2, 32], strides = [1, 1]} : vector<2x128xf32> to vector<2x32xf32>
    %411 = arith.negf %410 : vector<2x32xf32>
    %412 = math.exp %411 : vector<2x32xf32>
    %cst_122 = arith.constant 1.000000e+00 : f32
    %413 = vector.broadcast %cst_122 : f32 to vector<2x32xf32>
    %414 = arith.addf %413, %412 : vector<2x32xf32>
    %415 = arith.divf %413, %414 : vector<2x32xf32>
    %416 = vector.extract_strided_slice %409 {offsets = [0, 32], sizes = [2, 32], strides = [1, 1]} : vector<2x128xf32> to vector<2x32xf32>
    %417 = arith.negf %416 : vector<2x32xf32>
    %418 = math.exp %417 : vector<2x32xf32>
    %cst_123 = arith.constant 1.000000e+00 : f32
    %419 = vector.broadcast %cst_123 : f32 to vector<2x32xf32>
    %420 = arith.addf %419, %418 : vector<2x32xf32>
    %421 = arith.divf %419, %420 : vector<2x32xf32>
    %422 = vector.extract_strided_slice %409 {offsets = [0, 64], sizes = [2, 32], strides = [1, 1]} : vector<2x128xf32> to vector<2x32xf32>
    %423 = math.tanh %422 : vector<2x32xf32>
    %424 = vector.extract_strided_slice %409 {offsets = [0, 96], sizes = [2, 32], strides = [1, 1]} : vector<2x128xf32> to vector<2x32xf32>
    %425 = arith.negf %424 : vector<2x32xf32>
    %426 = math.exp %425 : vector<2x32xf32>
    %cst_124 = arith.constant 1.000000e+00 : f32
    %427 = vector.broadcast %cst_124 : f32 to vector<2x32xf32>
    %428 = arith.addf %427, %426 : vector<2x32xf32>
    %429 = arith.divf %427, %428 : vector<2x32xf32>
    %430 = arith.mulf %421, %343 : vector<2x32xf32>
    %431 = arith.mulf %415, %423 : vector<2x32xf32>
    %432 = arith.addf %430, %431 : vector<2x32xf32>
    %433 = math.tanh %432 : vector<2x32xf32>
    %434 = arith.mulf %429, %433 : vector<2x32xf32>
    %435 = vector.broadcast %403 : vector<2x1xf32> to vector<2x32xf32>
    %436 = arith.mulf %435, %432 : vector<2x32xf32>
    %cst_125 = arith.constant 1.000000e+00 : f32
    %437 = vector.broadcast %cst_125 : f32 to vector<2x1xf32>
    %438 = arith.subf %437, %403 : vector<2x1xf32>
    %439 = vector.broadcast %438 : vector<2x1xf32> to vector<2x32xf32>
    %440 = arith.mulf %439, %343 : vector<2x32xf32>
    %441 = arith.addf %436, %440 : vector<2x32xf32>
    %442 = vector.broadcast %403 : vector<2x1xf32> to vector<2x32xf32>
    %443 = arith.mulf %442, %434 : vector<2x32xf32>
    %cst_126 = arith.constant 1.000000e+00 : f32
    %444 = vector.broadcast %cst_126 : f32 to vector<2x1xf32>
    %445 = arith.subf %444, %403 : vector<2x1xf32>
    %446 = vector.broadcast %445 : vector<2x1xf32> to vector<2x32xf32>
    %447 = arith.mulf %446, %350 : vector<2x32xf32>
    %448 = arith.addf %443, %447 : vector<2x32xf32>
    %449 = vector.broadcast %403 : vector<2x1xf32> to vector<2x32xf32>
    %450 = arith.mulf %449, %434 : vector<2x32xf32>
    %cst_127 = arith.constant dense<0.000000e+00> : vector<2x128xf32>
    %451 = tpu.matmul %393, %8, %cst_127 {dimension_numbers = #tpu.dot_dimension_numbers<[1], [0], [0], [1], [0, 0, 1, 1], [], []>} : vector<2x32xf32>, vector<32x128xf32>, vector<2x128xf32> -> vector<2x128xf32>
    %452 = arith.addf %407, %451 : vector<2x128xf32>
    %453 = vector.extract_strided_slice %452 {offsets = [0, 0], sizes = [2, 32], strides = [1, 1]} : vector<2x128xf32> to vector<2x32xf32>
    %454 = arith.negf %453 : vector<2x32xf32>
    %455 = math.exp %454 : vector<2x32xf32>
    %cst_128 = arith.constant 1.000000e+00 : f32
    %456 = vector.broadcast %cst_128 : f32 to vector<2x32xf32>
    %457 = arith.addf %456, %455 : vector<2x32xf32>
    %458 = arith.divf %456, %457 : vector<2x32xf32>
    %459 = vector.extract_strided_slice %452 {offsets = [0, 32], sizes = [2, 32], strides = [1, 1]} : vector<2x128xf32> to vector<2x32xf32>
    %460 = arith.negf %459 : vector<2x32xf32>
    %461 = math.exp %460 : vector<2x32xf32>
    %cst_129 = arith.constant 1.000000e+00 : f32
    %462 = vector.broadcast %cst_129 : f32 to vector<2x32xf32>
    %463 = arith.addf %462, %461 : vector<2x32xf32>
    %464 = arith.divf %462, %463 : vector<2x32xf32>
    %465 = vector.extract_strided_slice %452 {offsets = [0, 64], sizes = [2, 32], strides = [1, 1]} : vector<2x128xf32> to vector<2x32xf32>
    %466 = math.tanh %465 : vector<2x32xf32>
    %467 = vector.extract_strided_slice %452 {offsets = [0, 96], sizes = [2, 32], strides = [1, 1]} : vector<2x128xf32> to vector<2x32xf32>
    %468 = arith.negf %467 : vector<2x32xf32>
    %469 = math.exp %468 : vector<2x32xf32>
    %cst_130 = arith.constant 1.000000e+00 : f32
    %470 = vector.broadcast %cst_130 : f32 to vector<2x32xf32>
    %471 = arith.addf %470, %469 : vector<2x32xf32>
    %472 = arith.divf %470, %471 : vector<2x32xf32>
    %473 = arith.mulf %464, %386 : vector<2x32xf32>
    %474 = arith.mulf %458, %466 : vector<2x32xf32>
    %475 = arith.addf %473, %474 : vector<2x32xf32>
    %476 = math.tanh %475 : vector<2x32xf32>
    %477 = arith.mulf %472, %476 : vector<2x32xf32>
    %478 = vector.broadcast %405 : vector<2x1xf32> to vector<2x32xf32>
    %479 = arith.mulf %478, %475 : vector<2x32xf32>
    %cst_131 = arith.constant 1.000000e+00 : f32
    %480 = vector.broadcast %cst_131 : f32 to vector<2x1xf32>
    %481 = arith.subf %480, %405 : vector<2x1xf32>
    %482 = vector.broadcast %481 : vector<2x1xf32> to vector<2x32xf32>
    %483 = arith.mulf %482, %386 : vector<2x32xf32>
    %484 = arith.addf %479, %483 : vector<2x32xf32>
    %485 = vector.broadcast %405 : vector<2x1xf32> to vector<2x32xf32>
    %486 = arith.mulf %485, %477 : vector<2x32xf32>
    %cst_132 = arith.constant 1.000000e+00 : f32
    %487 = vector.broadcast %cst_132 : f32 to vector<2x1xf32>
    %488 = arith.subf %487, %405 : vector<2x1xf32>
    %489 = vector.broadcast %488 : vector<2x1xf32> to vector<2x32xf32>
    %490 = arith.mulf %489, %393 : vector<2x32xf32>
    %491 = arith.addf %486, %490 : vector<2x32xf32>
    %492 = vector.broadcast %405 : vector<2x1xf32> to vector<2x32xf32>
    %493 = arith.mulf %492, %477 : vector<2x32xf32>
    %c4_133 = arith.constant 4 : index
    %c0_134 = arith.constant 0 : index
    %c0_135 = arith.constant 0 : index
    %494 = vector.load %arg7[%c4_133, %c0_134, %c0_135] : memref<8x2x64xf32, #tpu.memory_space<vmem>>, vector<1x2x32xf32>
    %495 = vector.shape_cast %494 : vector<1x2x32xf32> to vector<2x32xf32>
    %496 = vector.shape_cast %450 : vector<2x32xf32> to vector<1x2x32xf32>
    tpu.vector_store %arg7[%c4_133, %c0_134, %c0_135], %496 {strides = array<i32>} : memref<8x2x64xf32, #tpu.memory_space<vmem>>, vector<1x2x32xf32>,
    %c3_136 = arith.constant 3 : index
    %c0_137 = arith.constant 0 : index
    %c32_138 = arith.constant 32 : index
    %497 = vector.load %arg7[%c3_136, %c0_137, %c32_138] : memref<8x2x64xf32, #tpu.memory_space<vmem>>, vector<1x2x32xf32>
    %498 = vector.shape_cast %497 : vector<1x2x32xf32> to vector<2x32xf32>
    %499 = vector.shape_cast %493 : vector<2x32xf32> to vector<1x2x32xf32>
    tpu.vector_store %arg7[%c3_136, %c0_137, %c32_138], %499 {strides = array<i32>} : memref<8x2x64xf32, #tpu.memory_space<vmem>>, vector<1x2x32xf32>,
    %c5_139 = arith.constant 5 : index
    %c0_140 = arith.constant 0 : index
    %c0_141 = arith.constant 0 : index
    %500 = vector.load %arg2[%c5_139, %c0_140, %c0_141] : memref<8x2x1xf32, #tpu.memory_space<vmem>>, vector<1x2x1xf32>
    %501 = vector.shape_cast %500 : vector<1x2x1xf32> to vector<2x1xf32>
    %c2_142 = arith.constant 2 : index
    %c0_143 = arith.constant 0 : index
    %c0_144 = arith.constant 0 : index
    %502 = vector.load %arg2[%c2_142, %c0_143, %c0_144] : memref<8x2x1xf32, #tpu.memory_space<vmem>>, vector<1x2x1xf32>
    %503 = vector.shape_cast %502 : vector<1x2x1xf32> to vector<2x1xf32>
    %c10_145 = arith.constant 10 : index
    %c0_146 = arith.constant 0 : index
    %504 = vector.load %arg8[%c10_145, %c0_146] : memref<16x256xf32, #tpu.memory_space<vmem>>, vector<2x128xf32>
    %c4_147 = arith.constant 4 : index
    %c128_148 = arith.constant 128 : index
    %505 = vector.load %arg8[%c4_147, %c128_148] : memref<16x256xf32, #tpu.memory_space<vmem>>, vector<2x128xf32>
    %cst_149 = arith.constant dense<0.000000e+00> : vector<2x128xf32>
    %506 = tpu.matmul %448, %7, %cst_149 {dimension_numbers = #tpu.dot_dimension_numbers<[1], [0], [0], [1], [0, 0, 1, 1], [], []>} : vector<2x32xf32>, vector<32x128xf32>, vector<2x128xf32> -> vector<2x128xf32>
    %507 = arith.addf %504, %506 : vector<2x128xf32>
    %508 = vector.extract_strided_slice %507 {offsets = [0, 0], sizes = [2, 32], strides = [1, 1]} : vector<2x128xf32> to vector<2x32xf32>
    %509 = arith.negf %508 : vector<2x32xf32>
    %510 = math.exp %509 : vector<2x32xf32>
    %cst_150 = arith.constant 1.000000e+00 : f32
    %511 = vector.broadcast %cst_150 : f32 to vector<2x32xf32>
    %512 = arith.addf %511, %510 : vector<2x32xf32>
    %513 = arith.divf %511, %512 : vector<2x32xf32>
    %514 = vector.extract_strided_slice %507 {offsets = [0, 32], sizes = [2, 32], strides = [1, 1]} : vector<2x128xf32> to vector<2x32xf32>
    %515 = arith.negf %514 : vector<2x32xf32>
    %516 = math.exp %515 : vector<2x32xf32>
    %cst_151 = arith.constant 1.000000e+00 : f32
    %517 = vector.broadcast %cst_151 : f32 to vector<2x32xf32>
    %518 = arith.addf %517, %516 : vector<2x32xf32>
    %519 = arith.divf %517, %518 : vector<2x32xf32>
    %520 = vector.extract_strided_slice %507 {offsets = [0, 64], sizes = [2, 32], strides = [1, 1]} : vector<2x128xf32> to vector<2x32xf32>
    %521 = math.tanh %520 : vector<2x32xf32>
    %522 = vector.extract_strided_slice %507 {offsets = [0, 96], sizes = [2, 32], strides = [1, 1]} : vector<2x128xf32> to vector<2x32xf32>
    %523 = arith.negf %522 : vector<2x32xf32>
    %524 = math.exp %523 : vector<2x32xf32>
    %cst_152 = arith.constant 1.000000e+00 : f32
    %525 = vector.broadcast %cst_152 : f32 to vector<2x32xf32>
    %526 = arith.addf %525, %524 : vector<2x32xf32>
    %527 = arith.divf %525, %526 : vector<2x32xf32>
    %528 = arith.mulf %519, %441 : vector<2x32xf32>
    %529 = arith.mulf %513, %521 : vector<2x32xf32>
    %530 = arith.addf %528, %529 : vector<2x32xf32>
    %531 = math.tanh %530 : vector<2x32xf32>
    %532 = arith.mulf %527, %531 : vector<2x32xf32>
    %533 = vector.broadcast %501 : vector<2x1xf32> to vector<2x32xf32>
    %534 = arith.mulf %533, %530 : vector<2x32xf32>
    %cst_153 = arith.constant 1.000000e+00 : f32
    %535 = vector.broadcast %cst_153 : f32 to vector<2x1xf32>
    %536 = arith.subf %535, %501 : vector<2x1xf32>
    %537 = vector.broadcast %536 : vector<2x1xf32> to vector<2x32xf32>
    %538 = arith.mulf %537, %441 : vector<2x32xf32>
    %539 = arith.addf %534, %538 : vector<2x32xf32>
    %540 = vector.broadcast %501 : vector<2x1xf32> to vector<2x32xf32>
    %541 = arith.mulf %540, %532 : vector<2x32xf32>
    %cst_154 = arith.constant 1.000000e+00 : f32
    %542 = vector.broadcast %cst_154 : f32 to vector<2x1xf32>
    %543 = arith.subf %542, %501 : vector<2x1xf32>
    %544 = vector.broadcast %543 : vector<2x1xf32> to vector<2x32xf32>
    %545 = arith.mulf %544, %448 : vector<2x32xf32>
    %546 = arith.addf %541, %545 : vector<2x32xf32>
    %547 = vector.broadcast %501 : vector<2x1xf32> to vector<2x32xf32>
    %548 = arith.mulf %547, %532 : vector<2x32xf32>
    %cst_155 = arith.constant dense<0.000000e+00> : vector<2x128xf32>
    %549 = tpu.matmul %491, %8, %cst_155 {dimension_numbers = #tpu.dot_dimension_numbers<[1], [0], [0], [1], [0, 0, 1, 1], [], []>} : vector<2x32xf32>, vector<32x128xf32>, vector<2x128xf32> -> vector<2x128xf32>
    %550 = arith.addf %505, %549 : vector<2x128xf32>
    %551 = vector.extract_strided_slice %550 {offsets = [0, 0], sizes = [2, 32], strides = [1, 1]} : vector<2x128xf32> to vector<2x32xf32>
    %552 = arith.negf %551 : vector<2x32xf32>
    %553 = math.exp %552 : vector<2x32xf32>
    %cst_156 = arith.constant 1.000000e+00 : f32
    %554 = vector.broadcast %cst_156 : f32 to vector<2x32xf32>
    %555 = arith.addf %554, %553 : vector<2x32xf32>
    %556 = arith.divf %554, %555 : vector<2x32xf32>
    %557 = vector.extract_strided_slice %550 {offsets = [0, 32], sizes = [2, 32], strides = [1, 1]} : vector<2x128xf32> to vector<2x32xf32>
    %558 = arith.negf %557 : vector<2x32xf32>
    %559 = math.exp %558 : vector<2x32xf32>
    %cst_157 = arith.constant 1.000000e+00 : f32
    %560 = vector.broadcast %cst_157 : f32 to vector<2x32xf32>
    %561 = arith.addf %560, %559 : vector<2x32xf32>
    %562 = arith.divf %560, %561 : vector<2x32xf32>
    %563 = vector.extract_strided_slice %550 {offsets = [0, 64], sizes = [2, 32], strides = [1, 1]} : vector<2x128xf32> to vector<2x32xf32>
    %564 = math.tanh %563 : vector<2x32xf32>
    %565 = vector.extract_strided_slice %550 {offsets = [0, 96], sizes = [2, 32], strides = [1, 1]} : vector<2x128xf32> to vector<2x32xf32>
    %566 = arith.negf %565 : vector<2x32xf32>
    %567 = math.exp %566 : vector<2x32xf32>
    %cst_158 = arith.constant 1.000000e+00 : f32
    %568 = vector.broadcast %cst_158 : f32 to vector<2x32xf32>
    %569 = arith.addf %568, %567 : vector<2x32xf32>
    %570 = arith.divf %568, %569 : vector<2x32xf32>
    %571 = arith.mulf %562, %484 : vector<2x32xf32>
    %572 = arith.mulf %556, %564 : vector<2x32xf32>
    %573 = arith.addf %571, %572 : vector<2x32xf32>
    %574 = math.tanh %573 : vector<2x32xf32>
    %575 = arith.mulf %570, %574 : vector<2x32xf32>
    %576 = vector.broadcast %503 : vector<2x1xf32> to vector<2x32xf32>
    %577 = arith.mulf %576, %573 : vector<2x32xf32>
    %cst_159 = arith.constant 1.000000e+00 : f32
    %578 = vector.broadcast %cst_159 : f32 to vector<2x1xf32>
    %579 = arith.subf %578, %503 : vector<2x1xf32>
    %580 = vector.broadcast %579 : vector<2x1xf32> to vector<2x32xf32>
    %581 = arith.mulf %580, %484 : vector<2x32xf32>
    %582 = arith.addf %577, %581 : vector<2x32xf32>
    %583 = vector.broadcast %503 : vector<2x1xf32> to vector<2x32xf32>
    %584 = arith.mulf %583, %575 : vector<2x32xf32>
    %cst_160 = arith.constant 1.000000e+00 : f32
    %585 = vector.broadcast %cst_160 : f32 to vector<2x1xf32>
    %586 = arith.subf %585, %503 : vector<2x1xf32>
    %587 = vector.broadcast %586 : vector<2x1xf32> to vector<2x32xf32>
    %588 = arith.mulf %587, %491 : vector<2x32xf32>
    %589 = arith.addf %584, %588 : vector<2x32xf32>
    %590 = vector.broadcast %503 : vector<2x1xf32> to vector<2x32xf32>
    %591 = arith.mulf %590, %575 : vector<2x32xf32>
    %c5_161 = arith.constant 5 : index
    %c0_162 = arith.constant 0 : index
    %c0_163 = arith.constant 0 : index
    %592 = vector.load %arg7[%c5_161, %c0_162, %c0_163] : memref<8x2x64xf32, #tpu.memory_space<vmem>>, vector<1x2x32xf32>
    %593 = vector.shape_cast %592 : vector<1x2x32xf32> to vector<2x32xf32>
    %594 = vector.shape_cast %548 : vector<2x32xf32> to vector<1x2x32xf32>
    tpu.vector_store %arg7[%c5_161, %c0_162, %c0_163], %594 {strides = array<i32>} : memref<8x2x64xf32, #tpu.memory_space<vmem>>, vector<1x2x32xf32>,
    %c2_164 = arith.constant 2 : index
    %c0_165 = arith.constant 0 : index
    %c32_166 = arith.constant 32 : index
    %595 = vector.load %arg7[%c2_164, %c0_165, %c32_166] : memref<8x2x64xf32, #tpu.memory_space<vmem>>, vector<1x2x32xf32>
    %596 = vector.shape_cast %595 : vector<1x2x32xf32> to vector<2x32xf32>
    %597 = vector.shape_cast %591 : vector<2x32xf32> to vector<1x2x32xf32>
    tpu.vector_store %arg7[%c2_164, %c0_165, %c32_166], %597 {strides = array<i32>} : memref<8x2x64xf32, #tpu.memory_space<vmem>>, vector<1x2x32xf32>,
    %c6_167 = arith.constant 6 : index
    %c0_168 = arith.constant 0 : index
    %c0_169 = arith.constant 0 : index
    %598 = vector.load %arg2[%c6_167, %c0_168, %c0_169] : memref<8x2x1xf32, #tpu.memory_space<vmem>>, vector<1x2x1xf32>
    %599 = vector.shape_cast %598 : vector<1x2x1xf32> to vector<2x1xf32>
    %c1_170 = arith.constant 1 : index
    %c0_171 = arith.constant 0 : index
    %c0_172 = arith.constant 0 : index
    %600 = vector.load %arg2[%c1_170, %c0_171, %c0_172] : memref<8x2x1xf32, #tpu.memory_space<vmem>>, vector<1x2x1xf32>
    %601 = vector.shape_cast %600 : vector<1x2x1xf32> to vector<2x1xf32>
    %c12_173 = arith.constant 12 : index
    %c0_174 = arith.constant 0 : index
    %602 = vector.load %arg8[%c12_173, %c0_174] : memref<16x256xf32, #tpu.memory_space<vmem>>, vector<2x128xf32>
    %c2_175 = arith.constant 2 : index
    %c128_176 = arith.constant 128 : index
    %603 = vector.load %arg8[%c2_175, %c128_176] : memref<16x256xf32, #tpu.memory_space<vmem>>, vector<2x128xf32>
    %cst_177 = arith.constant dense<0.000000e+00> : vector<2x128xf32>
    %604 = tpu.matmul %546, %7, %cst_177 {dimension_numbers = #tpu.dot_dimension_numbers<[1], [0], [0], [1], [0, 0, 1, 1], [], []>} : vector<2x32xf32>, vector<32x128xf32>, vector<2x128xf32> -> vector<2x128xf32>
    %605 = arith.addf %602, %604 : vector<2x128xf32>
    %606 = vector.extract_strided_slice %605 {offsets = [0, 0], sizes = [2, 32], strides = [1, 1]} : vector<2x128xf32> to vector<2x32xf32>
    %607 = arith.negf %606 : vector<2x32xf32>
    %608 = math.exp %607 : vector<2x32xf32>
    %cst_178 = arith.constant 1.000000e+00 : f32
    %609 = vector.broadcast %cst_178 : f32 to vector<2x32xf32>
    %610 = arith.addf %609, %608 : vector<2x32xf32>
    %611 = arith.divf %609, %610 : vector<2x32xf32>
    %612 = vector.extract_strided_slice %605 {offsets = [0, 32], sizes = [2, 32], strides = [1, 1]} : vector<2x128xf32> to vector<2x32xf32>
    %613 = arith.negf %612 : vector<2x32xf32>
    %614 = math.exp %613 : vector<2x32xf32>
    %cst_179 = arith.constant 1.000000e+00 : f32
    %615 = vector.broadcast %cst_179 : f32 to vector<2x32xf32>
    %616 = arith.addf %615, %614 : vector<2x32xf32>
    %617 = arith.divf %615, %616 : vector<2x32xf32>
    %618 = vector.extract_strided_slice %605 {offsets = [0, 64], sizes = [2, 32], strides = [1, 1]} : vector<2x128xf32> to vector<2x32xf32>
    %619 = math.tanh %618 : vector<2x32xf32>
    %620 = vector.extract_strided_slice %605 {offsets = [0, 96], sizes = [2, 32], strides = [1, 1]} : vector<2x128xf32> to vector<2x32xf32>
    %621 = arith.negf %620 : vector<2x32xf32>
    %622 = math.exp %621 : vector<2x32xf32>
    %cst_180 = arith.constant 1.000000e+00 : f32
    %623 = vector.broadcast %cst_180 : f32 to vector<2x32xf32>
    %624 = arith.addf %623, %622 : vector<2x32xf32>
    %625 = arith.divf %623, %624 : vector<2x32xf32>
    %626 = arith.mulf %617, %539 : vector<2x32xf32>
    %627 = arith.mulf %611, %619 : vector<2x32xf32>
    %628 = arith.addf %626, %627 : vector<2x32xf32>
    %629 = math.tanh %628 : vector<2x32xf32>
    %630 = arith.mulf %625, %629 : vector<2x32xf32>
    %631 = vector.broadcast %599 : vector<2x1xf32> to vector<2x32xf32>
    %632 = arith.mulf %631, %628 : vector<2x32xf32>
    %cst_181 = arith.constant 1.000000e+00 : f32
    %633 = vector.broadcast %cst_181 : f32 to vector<2x1xf32>
    %634 = arith.subf %633, %599 : vector<2x1xf32>
    %635 = vector.broadcast %634 : vector<2x1xf32> to vector<2x32xf32>
    %636 = arith.mulf %635, %539 : vector<2x32xf32>
    %637 = arith.addf %632, %636 : vector<2x32xf32>
    %638 = vector.broadcast %599 : vector<2x1xf32> to vector<2x32xf32>
    %639 = arith.mulf %638, %630 : vector<2x32xf32>
    %cst_182 = arith.constant 1.000000e+00 : f32
    %640 = vector.broadcast %cst_182 : f32 to vector<2x1xf32>
    %641 = arith.subf %640, %599 : vector<2x1xf32>
    %642 = vector.broadcast %641 : vector<2x1xf32> to vector<2x32xf32>
    %643 = arith.mulf %642, %546 : vector<2x32xf32>
    %644 = arith.addf %639, %643 : vector<2x32xf32>
    %645 = vector.broadcast %599 : vector<2x1xf32> to vector<2x32xf32>
    %646 = arith.mulf %645, %630 : vector<2x32xf32>
    %cst_183 = arith.constant dense<0.000000e+00> : vector<2x128xf32>
    %647 = tpu.matmul %589, %8, %cst_183 {dimension_numbers = #tpu.dot_dimension_numbers<[1], [0], [0], [1], [0, 0, 1, 1], [], []>} : vector<2x32xf32>, vector<32x128xf32>, vector<2x128xf32> -> vector<2x128xf32>
    %648 = arith.addf %603, %647 : vector<2x128xf32>
    %649 = vector.extract_strided_slice %648 {offsets = [0, 0], sizes = [2, 32], strides = [1, 1]} : vector<2x128xf32> to vector<2x32xf32>
    %650 = arith.negf %649 : vector<2x32xf32>
    %651 = math.exp %650 : vector<2x32xf32>
    %cst_184 = arith.constant 1.000000e+00 : f32
    %652 = vector.broadcast %cst_184 : f32 to vector<2x32xf32>
    %653 = arith.addf %652, %651 : vector<2x32xf32>
    %654 = arith.divf %652, %653 : vector<2x32xf32>
    %655 = vector.extract_strided_slice %648 {offsets = [0, 32], sizes = [2, 32], strides = [1, 1]} : vector<2x128xf32> to vector<2x32xf32>
    %656 = arith.negf %655 : vector<2x32xf32>
    %657 = math.exp %656 : vector<2x32xf32>
    %cst_185 = arith.constant 1.000000e+00 : f32
    %658 = vector.broadcast %cst_185 : f32 to vector<2x32xf32>
    %659 = arith.addf %658, %657 : vector<2x32xf32>
    %660 = arith.divf %658, %659 : vector<2x32xf32>
    %661 = vector.extract_strided_slice %648 {offsets = [0, 64], sizes = [2, 32], strides = [1, 1]} : vector<2x128xf32> to vector<2x32xf32>
    %662 = math.tanh %661 : vector<2x32xf32>
    %663 = vector.extract_strided_slice %648 {offsets = [0, 96], sizes = [2, 32], strides = [1, 1]} : vector<2x128xf32> to vector<2x32xf32>
    %664 = arith.negf %663 : vector<2x32xf32>
    %665 = math.exp %664 : vector<2x32xf32>
    %cst_186 = arith.constant 1.000000e+00 : f32
    %666 = vector.broadcast %cst_186 : f32 to vector<2x32xf32>
    %667 = arith.addf %666, %665 : vector<2x32xf32>
    %668 = arith.divf %666, %667 : vector<2x32xf32>
    %669 = arith.mulf %660, %582 : vector<2x32xf32>
    %670 = arith.mulf %654, %662 : vector<2x32xf32>
    %671 = arith.addf %669, %670 : vector<2x32xf32>
    %672 = math.tanh %671 : vector<2x32xf32>
    %673 = arith.mulf %668, %672 : vector<2x32xf32>
    %674 = vector.broadcast %601 : vector<2x1xf32> to vector<2x32xf32>
    %675 = arith.mulf %674, %671 : vector<2x32xf32>
    %cst_187 = arith.constant 1.000000e+00 : f32
    %676 = vector.broadcast %cst_187 : f32 to vector<2x1xf32>
    %677 = arith.subf %676, %601 : vector<2x1xf32>
    %678 = vector.broadcast %677 : vector<2x1xf32> to vector<2x32xf32>
    %679 = arith.mulf %678, %582 : vector<2x32xf32>
    %680 = arith.addf %675, %679 : vector<2x32xf32>
    %681 = vector.broadcast %601 : vector<2x1xf32> to vector<2x32xf32>
    %682 = arith.mulf %681, %673 : vector<2x32xf32>
    %cst_188 = arith.constant 1.000000e+00 : f32
    %683 = vector.broadcast %cst_188 : f32 to vector<2x1xf32>
    %684 = arith.subf %683, %601 : vector<2x1xf32>
    %685 = vector.broadcast %684 : vector<2x1xf32> to vector<2x32xf32>
    %686 = arith.mulf %685, %589 : vector<2x32xf32>
    %687 = arith.addf %682, %686 : vector<2x32xf32>
    %688 = vector.broadcast %601 : vector<2x1xf32> to vector<2x32xf32>
    %689 = arith.mulf %688, %673 : vector<2x32xf32>
    %c6_189 = arith.constant 6 : index
    %c0_190 = arith.constant 0 : index
    %c0_191 = arith.constant 0 : index
    %690 = vector.load %arg7[%c6_189, %c0_190, %c0_191] : memref<8x2x64xf32, #tpu.memory_space<vmem>>, vector<1x2x32xf32>
    %691 = vector.shape_cast %690 : vector<1x2x32xf32> to vector<2x32xf32>
    %692 = vector.shape_cast %646 : vector<2x32xf32> to vector<1x2x32xf32>
    tpu.vector_store %arg7[%c6_189, %c0_190, %c0_191], %692 {strides = array<i32>} : memref<8x2x64xf32, #tpu.memory_space<vmem>>, vector<1x2x32xf32>,
    %c1_192 = arith.constant 1 : index
    %c0_193 = arith.constant 0 : index
    %c32_194 = arith.constant 32 : index
    %693 = vector.load %arg7[%c1_192, %c0_193, %c32_194] : memref<8x2x64xf32, #tpu.memory_space<vmem>>, vector<1x2x32xf32>
    %694 = vector.shape_cast %693 : vector<1x2x32xf32> to vector<2x32xf32>
    %695 = vector.shape_cast %689 : vector<2x32xf32> to vector<1x2x32xf32>
    tpu.vector_store %arg7[%c1_192, %c0_193, %c32_194], %695 {strides = array<i32>} : memref<8x2x64xf32, #tpu.memory_space<vmem>>, vector<1x2x32xf32>,
    %c7_195 = arith.constant 7 : index
    %c0_196 = arith.constant 0 : index
    %c0_197 = arith.constant 0 : index
    %696 = vector.load %arg2[%c7_195, %c0_196, %c0_197] : memref<8x2x1xf32, #tpu.memory_space<vmem>>, vector<1x2x1xf32>
    %697 = vector.shape_cast %696 : vector<1x2x1xf32> to vector<2x1xf32>
    %c0_198 = arith.constant 0 : index
    %c0_199 = arith.constant 0 : index
    %c0_200 = arith.constant 0 : index
    %698 = vector.load %arg2[%c0_198, %c0_199, %c0_200] : memref<8x2x1xf32, #tpu.memory_space<vmem>>, vector<1x2x1xf32>
    %699 = vector.shape_cast %698 : vector<1x2x1xf32> to vector<2x1xf32>
    %c14_201 = arith.constant 14 : index
    %c0_202 = arith.constant 0 : index
    %700 = vector.load %arg8[%c14_201, %c0_202] : memref<16x256xf32, #tpu.memory_space<vmem>>, vector<2x128xf32>
    %c0_203 = arith.constant 0 : index
    %c128_204 = arith.constant 128 : index
    %701 = vector.load %arg8[%c0_203, %c128_204] : memref<16x256xf32, #tpu.memory_space<vmem>>, vector<2x128xf32>
    %cst_205 = arith.constant dense<0.000000e+00> : vector<2x128xf32>
    %702 = tpu.matmul %644, %7, %cst_205 {dimension_numbers = #tpu.dot_dimension_numbers<[1], [0], [0], [1], [0, 0, 1, 1], [], []>} : vector<2x32xf32>, vector<32x128xf32>, vector<2x128xf32> -> vector<2x128xf32>
    %703 = arith.addf %700, %702 : vector<2x128xf32>
    %704 = vector.extract_strided_slice %703 {offsets = [0, 0], sizes = [2, 32], strides = [1, 1]} : vector<2x128xf32> to vector<2x32xf32>
    %705 = arith.negf %704 : vector<2x32xf32>
    %706 = math.exp %705 : vector<2x32xf32>
    %cst_206 = arith.constant 1.000000e+00 : f32
    %707 = vector.broadcast %cst_206 : f32 to vector<2x32xf32>
    %708 = arith.addf %707, %706 : vector<2x32xf32>
    %709 = arith.divf %707, %708 : vector<2x32xf32>
    %710 = vector.extract_strided_slice %703 {offsets = [0, 32], sizes = [2, 32], strides = [1, 1]} : vector<2x128xf32> to vector<2x32xf32>
    %711 = arith.negf %710 : vector<2x32xf32>
    %712 = math.exp %711 : vector<2x32xf32>
    %cst_207 = arith.constant 1.000000e+00 : f32
    %713 = vector.broadcast %cst_207 : f32 to vector<2x32xf32>
    %714 = arith.addf %713, %712 : vector<2x32xf32>
    %715 = arith.divf %713, %714 : vector<2x32xf32>
    %716 = vector.extract_strided_slice %703 {offsets = [0, 64], sizes = [2, 32], strides = [1, 1]} : vector<2x128xf32> to vector<2x32xf32>
    %717 = math.tanh %716 : vector<2x32xf32>
    %718 = vector.extract_strided_slice %703 {offsets = [0, 96], sizes = [2, 32], strides = [1, 1]} : vector<2x128xf32> to vector<2x32xf32>
    %719 = arith.negf %718 : vector<2x32xf32>
    %720 = math.exp %719 : vector<2x32xf32>
    %cst_208 = arith.constant 1.000000e+00 : f32
    %721 = vector.broadcast %cst_208 : f32 to vector<2x32xf32>
    %722 = arith.addf %721, %720 : vector<2x32xf32>
    %723 = arith.divf %721, %722 : vector<2x32xf32>
    %724 = arith.mulf %715, %637 : vector<2x32xf32>
    %725 = arith.mulf %709, %717 : vector<2x32xf32>
    %726 = arith.addf %724, %725 : vector<2x32xf32>
    %727 = math.tanh %726 : vector<2x32xf32>
    %728 = arith.mulf %723, %727 : vector<2x32xf32>
    %729 = vector.broadcast %697 : vector<2x1xf32> to vector<2x32xf32>
    %730 = arith.mulf %729, %728 : vector<2x32xf32>
    %cst_209 = arith.constant dense<0.000000e+00> : vector<2x128xf32>
    %731 = tpu.matmul %687, %8, %cst_209 {dimension_numbers = #tpu.dot_dimension_numbers<[1], [0], [0], [1], [0, 0, 1, 1], [], []>} : vector<2x32xf32>, vector<32x128xf32>, vector<2x128xf32> -> vector<2x128xf32>
    %732 = arith.addf %701, %731 : vector<2x128xf32>
    %733 = vector.extract_strided_slice %732 {offsets = [0, 0], sizes = [2, 32], strides = [1, 1]} : vector<2x128xf32> to vector<2x32xf32>
    %734 = arith.negf %733 : vector<2x32xf32>
    %735 = math.exp %734 : vector<2x32xf32>
    %cst_210 = arith.constant 1.000000e+00 : f32
    %736 = vector.broadcast %cst_210 : f32 to vector<2x32xf32>
    %737 = arith.addf %736, %735 : vector<2x32xf32>
    %738 = arith.divf %736, %737 : vector<2x32xf32>
    %739 = vector.extract_strided_slice %732 {offsets = [0, 32], sizes = [2, 32], strides = [1, 1]} : vector<2x128xf32> to vector<2x32xf32>
    %740 = arith.negf %739 : vector<2x32xf32>
    %741 = math.exp %740 : vector<2x32xf32>
    %cst_211 = arith.constant 1.000000e+00 : f32
    %742 = vector.broadcast %cst_211 : f32 to vector<2x32xf32>
    %743 = arith.addf %742, %741 : vector<2x32xf32>
    %744 = arith.divf %742, %743 : vector<2x32xf32>
    %745 = vector.extract_strided_slice %732 {offsets = [0, 64], sizes = [2, 32], strides = [1, 1]} : vector<2x128xf32> to vector<2x32xf32>
    %746 = math.tanh %745 : vector<2x32xf32>
    %747 = vector.extract_strided_slice %732 {offsets = [0, 96], sizes = [2, 32], strides = [1, 1]} : vector<2x128xf32> to vector<2x32xf32>
    %748 = arith.negf %747 : vector<2x32xf32>
    %749 = math.exp %748 : vector<2x32xf32>
    %cst_212 = arith.constant 1.000000e+00 : f32
    %750 = vector.broadcast %cst_212 : f32 to vector<2x32xf32>
    %751 = arith.addf %750, %749 : vector<2x32xf32>
    %752 = arith.divf %750, %751 : vector<2x32xf32>
    %753 = arith.mulf %744, %680 : vector<2x32xf32>
    %754 = arith.mulf %738, %746 : vector<2x32xf32>
    %755 = arith.addf %753, %754 : vector<2x32xf32>
    %756 = math.tanh %755 : vector<2x32xf32>
    %757 = arith.mulf %752, %756 : vector<2x32xf32>
    %758 = vector.broadcast %699 : vector<2x1xf32> to vector<2x32xf32>
    %759 = arith.mulf %758, %757 : vector<2x32xf32>
    %c7_213 = arith.constant 7 : index
    %c0_214 = arith.constant 0 : index
    %c0_215 = arith.constant 0 : index
    %760 = vector.load %arg7[%c7_213, %c0_214, %c0_215] : memref<8x2x64xf32, #tpu.memory_space<vmem>>, vector<1x2x32xf32>
    %761 = vector.shape_cast %760 : vector<1x2x32xf32> to vector<2x32xf32>
    %762 = vector.shape_cast %730 : vector<2x32xf32> to vector<1x2x32xf32>
    tpu.vector_store %arg7[%c7_213, %c0_214, %c0_215], %762 {strides = array<i32>} : memref<8x2x64xf32, #tpu.memory_space<vmem>>, vector<1x2x32xf32>,
    %c0_216 = arith.constant 0 : index
    %c0_217 = arith.constant 0 : index
    %c32_218 = arith.constant 32 : index
    %763 = vector.load %arg7[%c0_216, %c0_217, %c32_218] : memref<8x2x64xf32, #tpu.memory_space<vmem>>, vector<1x2x32xf32>
    %764 = vector.shape_cast %763 : vector<1x2x32xf32> to vector<2x32xf32>
    %765 = vector.shape_cast %759 : vector<2x32xf32> to vector<1x2x32xf32>
    tpu.vector_store %arg7[%c0_216, %c0_217, %c32_218], %765 {strides = array<i32>} : memref<8x2x64xf32, #tpu.memory_space<vmem>>, vector<1x2x32xf32>,
    return
  }
  func.func @transform_0(%arg0: i32) -> (i32, i32) {
    %c0_i32 = arith.constant 0 : i32
    %c0_i32_0 = arith.constant 0 : i32
    %c0_i32_1 = arith.constant 0 : i32
    return %c0_i32, %c0_i32_0 : i32, i32
  }
  func.func @transform_1(%arg0: i32) -> (i32, i32, i32) {
    %c0_i32 = arith.constant 0 : i32
    %c0_i32_0 = arith.constant 0 : i32
    %c0_i32_1 = arith.constant 0 : i32
    %c0_i32_2 = arith.constant 0 : i32
    return %c0_i32, %c0_i32_0, %c0_i32_1 : i32, i32, i32
  }
  func.func @transform_2(%arg0: i32) -> (i32, i32) {
    %c0_i32 = arith.constant 0 : i32
    %c0_i32_0 = arith.constant 0 : i32
    %c0_i32_1 = arith.constant 0 : i32
    return %c0_i32, %c0_i32_0 : i32, i32
  }
  func.func @transform_3(%arg0: i32) -> (i32, i32) {
    %c0_i32 = arith.constant 0 : i32
    %c0_i32_0 = arith.constant 0 : i32
    %c0_i32_1 = arith.constant 0 : i32
    return %c0_i32, %c0_i32_0 : i32, i32
  }
  func.func @transform_4(%arg0: i32) -> (i32, i32) {
    %c0_i32 = arith.constant 0 : i32
    %c0_i32_0 = arith.constant 0 : i32
    %c0_i32_1 = arith.constant 0 : i32
    return %c0_i32, %c0_i32_0 : i32, i32
  }
  func.func @transform_5(%arg0: i32) -> (i32, i32) {
    %c0_i32 = arith.constant 0 : i32
    %c0_i32_0 = arith.constant 0 : i32
    %c0_i32_1 = arith.constant 0 : i32
    return %c0_i32, %c0_i32_0 : i32, i32
  }
  func.func @transform_6(%arg0: i32) -> (i32, i32, i32) {
    %c0_i32 = arith.constant 0 : i32
    %c0_i32_0 = arith.constant 0 : i32
    %c0_i32_1 = arith.constant 0 : i32
    %c0_i32_2 = arith.constant 0 : i32
    return %c0_i32, %c0_i32_0, %c0_i32_1 : i32, i32, i32
  }
}

</mosaic_0001>

<bundles_post_ra>
// kernel: tpu_custom_call.1
= control target key start
LH: loop header
LB: loop body
LE: loop exit
PB: predicated region body
PF: predicated region fallthrough
CT: control target
= control target key end

     0   :  { %11 = vsyncpa [#allocation4], 0  ;;  %s3544_s0 = inlined_call_operand.vmem [shape: f32[16,64], index: 0, kind: input, shape index: {}]   ;;  %s3545_s1 = inlined_call_operand.vmem [shape: f32[8,2,1], index: 1, kind: input, shape index: {}]   ;;  %s3546_s2 = inlined_call_operand.hbm [shape: f32[64,256], index: 2, kind: input, shape index: {}]   ;;  %s3547_s3 = inlined_call_operand.vmem [shape: f32[1,256], index: 3, kind: input, shape index: {}]   ;;  %s3548_s4 = inlined_call_operand.hbm [shape: f32[32,128], index: 4, kind: input, shape index: {}]   ;;  %s3549_s5 = inlined_call_operand.hbm [shape: f32[32,128], index: 5, kind: input, shape index: {}]   ;;  %s3550_s6 = inlined_call_operand.hbm [shape: f32[8,2,64], index: 6, kind: output, shape index: {}]  }
   0x1   :  { %12 = vsyncpa [#allocation7], 0 }
   0x2   :  { %13 = vsyncpa [#allocation5], 0  ;;  %s2926_s21 = smov [#allocation6]  }
   0x3   :  { %s37_s22 = sshll.u32 %s2926_s21, 4  ;;  %s38_s22 = int_to_ptr.vmem [resolvable:$true] %s37_s22 }
   0x4   :  { %s2848_s23 = scalar_lea.vmem %s38_s22, 512  ;;  %p2853_p1 = scmp.lt.s32.totalorder %s38_s22, %s38_s22 }
   0x5   :  { %p2849_p0 = scmp.ne.s32.totalorder %s38_s22, %s2848_s23  ;;  %p2854_p2 = scmp.lt.s32.totalorder %s2848_s23, %s2848_s23 }
   0x7   :  { %p2855_p3 = por %p2854_p2, %p2853_p1 }
   0x9   :  { %p2856_p4 = pnand %p2855_p3, %p2849_p0 }
   0xb   :  { %2859 = shalt.err (!%p2856_p4)
}
   0xc   :  { %s2927_s24 = smov 128   ;;  %s2928_s25 = smov 8  }
   0xd   :  { %43 = dma.hbm_to_vmem [thread:$0]  %s3548_s4, 512, %s38_s22, [#allocation7], %s2927_s24, %s2927_s24, %s2928_s25  }
   0xe   :  { %s2929_s28 = smov [#allocation3]  }
   0xf   :  { %s23_s29 = sshll.u32 %s2929_s28, 4  ;;  %s24_s29 = int_to_ptr.vmem [resolvable:$true] %s23_s29 }
  0x10   :  { %s2868_s30 = scalar_lea.vmem %s24_s29, 2048  ;;  %p2873_p6 = scmp.lt.s32.totalorder %s24_s29, %s24_s29 }
  0x11   :  { %p2869_p5 = scmp.ne.s32.totalorder %s24_s29, %s2868_s30  ;;  %p2874_p7 = scmp.lt.s32.totalorder %s2868_s30, %s2868_s30 }
  0x13   :  { %p2875_p8 = por %p2874_p7, %p2873_p6 }
  0x15   :  { %p2876_p9 = pnand %p2875_p8, %p2869_p5 }
  0x17   :  { %2879 = shalt.err (!%p2876_p9)
}
  0x18   :  { %s2930_s7 = smov 256   ;;  %s2931_s8 = smov 16  }
  0x19   :  { %29 = dma.hbm_to_vmem [thread:$0]  %s3546_s2, 2048, %s24_s29, [#allocation4], %s2930_s7, %s2930_s7, %s2931_s8  }
  0x1a   :  { %s2932_s11 = smov [#allocation8]  }
  0x1b   :  { %s49_s12 = sshll.u32 %s2932_s11, 4  ;;  %s50_s12 = int_to_ptr.vmem [resolvable:$true] %s49_s12 }
  0x1c   :  { %s2888_s4 = scalar_lea.vmem %s50_s12, 512  ;;  %p2893_p11 = scmp.lt.s32.totalorder %s50_s12, %s50_s12 }
  0x1d   :  { %p2889_p10 = scmp.ne.s32.totalorder %s50_s12, %s2888_s4  ;;  %p2894_p12 = scmp.lt.s32.totalorder %s2888_s4, %s2888_s4 }
  0x1f   :  { %p2895_p13 = por %p2894_p12, %p2893_p11 }
  0x21   :  { %p2896_p0 = pnand %p2895_p13, %p2889_p10 }
  0x23   :  { %2899 = shalt.err (!%p2896_p0)
}
  0x24   :  { %55 = dma.hbm_to_vmem [thread:$0]  %s3549_s5, 512, %s50_s12, [#allocation7], %s2927_s24, %s2927_s24, %s2928_s25  }
  0x25   :  { %2920 = dma.done.wait [#allocation4], 2048  }
  0x26   :  { %2921 = vsyncadd [#allocation4], 4294965248 }
  0x27   :  { %2922 = dma.done.wait [#allocation7], 1024  }
  0x28   :  { %2923 = vsyncadd [#allocation7], 4294966272  ;;  %v2933_v0 = vmov 0.0   ;;  %vm2934_vm0 = vmmov 0   ;;  %v82_v1 = vld [vmem:[#allocation3 + $0x78] sm:$0xff]  ;;  %v81_v2 = vld [vmem:[#allocation3 + $0x70] sm:$0xff]  ;;  %v85_v28 = vlaneseq }
  0x29   :  { %2511 = vmatprep.subr.mxu1 %v2933_v0  ;;  %166 = vmatprep.mubr.f32.mxu0 %v2933_v0  ;;  %v80_v3 = vld [vmem:[#allocation3 + $0x68] sm:$0xff]  ;;  %v79_v4 = vld [vmem:[#allocation3 + $0x60] sm:$0xff]  ;;  %v78_v5 = vld [vmem:[#allocation3 + $0x58] sm:$0xff]  ;;  %vm95_vm1 = vcmask 523264   ;;  %v2935_v27 = vmov 0   ;;  %s2937_s20 = smov 32  }
  0x2a   :  { %2519 = vmatprep.mubr.msk.f32.mxu1 %vm2934_vm0, %v2933_v0  ;;  %118 = vmatprep.subr.mxu0 %v82_v1  ;;  %v77_v6 = vld [vmem:[#allocation3 + $0x50] sm:$0xff]  ;;  %v76_v7 = vld [vmem:[#allocation3 + $0x48] sm:$0xff]  ;;  %v2989_v8 = vld [vmem:[#allocation6 + $0x18] sm:$0xff]  ;;  %v86_v29 = vshrl.u32 %v85_v28, 7  ;;  %s2938_s23 = smov 96   ;;  %vm196_vm2 = vcmask 261120  }
  0x2b   :  { %119 = vmatpush1.msra.mxu0 %v81_v2  ;;  %v75_v9 = vld [vmem:[#allocation3 + $0x40] sm:$0xff]  ;;  %2512 = vmatpush3.msra.mxu1 %v2989_v8  ;;  %v2992_v10 = vld [vmem:[#allocation6 + $0x10] sm:$0xff]  ;;  %v74_v11 = vld [vmem:[#allocation3 + $0x38] sm:$0xff]  ;;  %vm439_vm3 = vcmask 254976   ;;  %vm446_vm4 = vcmask 517376  }
  0x2c   :  { %120 = vmatprep.subr.mxu0 %v80_v3  ;;  %2513 = vmatprep.subr.mxu1 %v2933_v0  ;;  %v2995_v12 = vld [vmem:[#allocation6 + $0x8] sm:$0xff]  ;;  %v73_v13 = vld [vmem:[#allocation3 + $0x30] sm:$0xff]  ;;  %v2999_v15 = vld [vmem:[#allocation6] sm:$0xff]  ;;  %v87_v30 = vsub.s32 0, %v86_v29  ;;  %v91_v32 = vsub.s32 1, %v86_v29 }
  0x2d   :  { %121 = vmatpush1.msra.mxu0 %v79_v4  ;;  %2514 = vmatpush3.msra.mxu1 %v2992_v10  ;;  %v72_v14 = vld [vmem:[#allocation3 + $0x28] sm:$0xff]  ;;  %v71_v16 = vld [vmem:[#allocation3 + $0x20] sm:$0xff]  ;;  %v70_v17 = vld [vmem:[#allocation3 + $0x18] sm:$0xff] }
  0x2e   :  { %122 = vmatprep.subr.mxu0 %v78_v5  ;;  %2515 = vmatprep.subr.mxu1 %v2933_v0  ;;  %v69_v18 = vld [vmem:[#allocation3 + $0x10] sm:$0xff]  ;;  %v3004_v19 = vld [vmem:[#allocation8 + $0x18] sm:$0xff]  ;;  %v68_v20 = vld [vmem:[#allocation3 + $0x8] sm:$0xff] }
  0x2f   :  { %123 = vmatpush1.msra.mxu0 %v77_v6  ;;  %2516 = vmatpush3.msra.mxu1 %v2995_v12  ;;  %v67_v21 = vld [vmem:[#allocation3] sm:$0xff]  ;;  %v3008_v22 = vld [vmem:[#allocation8 + $0x10] sm:$0xff]  ;;  %v3015_v24 = vld [vmem:[#allocation8 + $0x8] sm:$0xff] }
  0x30   :  { %124 = vmatprep.subr.mxu0 %v76_v7  ;;  %2517 = vmatprep.subr.mxu1 %v2933_v0  ;;  %v65_v23 = vld [vmem:[%s3544_s0] sm:$0xff]  ;;  %v66_v26 = vld [vmem:[%s3544_s0 + $0x8] sm:$0xff] }
  0x31   :  { %125 = vmatpush1.msra.mxu0 %v75_v9  ;;  %2518 = vmatpush3.msra.mxu1 %v2999_v15  ;;  %v3020_v25 = vld [vmem:[#allocation8] sm:$0xff] }
  0x32   :  { %126 = vmatprep.subr.mxu0 %v74_v11  ;;  %2522 = vmatprep.subr.mxu1 %v2933_v0  ;;  %v83_v31 = vld [vmem:[%s3547_s3] sm:$0x3]  ;;  %s2936_s3 = smov 64  }
  0x33   :  { %127 = vmatpush1.msra.mxu0 %v73_v13  ;;  %2520 = vmatmul.mubr.f32.vlgmr.msra.gmra.mxu1 %v2933_v0  ;;  %v88_v34 = vrot.slane %v83_v31, %v87_v30  ;;  %v92_v36 = vrot.slane %v83_v31, %v91_v32  ;;  %v191_v54 = vld [vmem:[%s3545_s1] sm:$0x3] }
  0x34   :  { %128 = vmatprep.subr.mxu0 %v72_v14  ;;  %2523 = vmatpush3.msra.mxu1 %v3004_v19  ;;  %v301_v4 = vsub.f32 1.0, %v191_v54 }
  0x35   :  { %129 = vmatpush1.msra.mxu0 %v71_v16  ;;  %2524 = vmatprep.subr.mxu1 %v2933_v0  ;;  %v2387_v16 = vld [vmem:[%s3545_s1 + $0xe] sm:$0x3] }
  0x36   :  { %130 = vmatprep.subr.mxu0 %v70_v17  ;;  %2525 = vmatpush3.msra.mxu1 %v3008_v22 }
  0x37   :  { %131 = vmatpush1.msra.mxu0 %v69_v18  ;;  %2526 = vmatprep.subr.mxu1 %v2933_v0  ;;  %v420_v18 = vsub.f32 1.0, %v2387_v16 }
  0x38   :  { %132 = vmatprep.subr.mxu0 %v68_v20  ;;  %2527 = vmatpush3.msra.mxu1 %v3015_v24 }
  0x39   :  { %133 = vmatpush1.msra.mxu0 %v67_v21  ;;  %2528 = vmatprep.subr.mxu1 %v2933_v0 }
  0x3a   :  { %2385 = vmatmul.mubr.msk.f32.vlgmr.msra.gmra.mxu0 %vm95_vm1, %v65_v23  ;;  %2530 = vmatprep.mubr.msk.f32.mxu1 %vm2934_vm0, %v2933_v0 }
  0x3b   :  { %172 = vmatprep.mubr.f32.mxu0 %v2933_v0  ;;  %2529 = vmatpush3.msra.mxu1 %v3020_v25 }
  0x3c   :  { %2533 = vmatprep.subr.mxu0 %v2933_v0  ;;  %2531 = vmatmul.mubr.f32.vlgmr.msra.gmra.mxu1 %v2933_v0 }
  0x3d   :  { %2534 = vmatpush3.msra.mxu0 %v2989_v8  ;;  %2544 = vmatprep.subr.mxu1 %v2933_v0 }
  0x3e   :  { %2386 = vmatmul.mubr.msk.f32.gmra.mxu0 %vm95_vm1, %v66_v26  ;;  %2535 = vmatprep.subr.mxu0 %v2933_v0 }
  0x3f   :  { %2541 = vmatprep.mubr.msk.f32.mxu0 %vm2934_vm0, %v2933_v0  ;;  %2536 = vmatpush3.msra.mxu0 %v2992_v10 }
  0x40   :  { %2545 = vmatpush3.msra.mxu1 %v3004_v19  ;;  %2537 = vmatprep.subr.mxu0 %v2933_v0 }
  0x41   :  { %2546 = vmatprep.subr.mxu1 %v2933_v0  ;;  %2538 = vmatpush3.msra.mxu0 %v2995_v12 }
  0x42   :  { %2547 = vmatpush3.msra.mxu1 %v3008_v22  ;;  %2539 = vmatprep.subr.mxu0 %v2933_v0 }
  0x43   :  { %2548 = vmatprep.subr.mxu1 %v2933_v0  ;;  %2540 = vmatpush3.msra.mxu0 %v2999_v15 }
  0x44   :  { %2549 = vmatpush3.msra.mxu1 %v3015_v24  ;;  %2552 = vmatprep.mubr.msk.f32.mxu1 %vm2934_vm0, %v2933_v0 }
  0x45   :  { %2550 = vmatprep.subr.mxu1 %v2933_v0  ;;  %2555 = vmatprep.subr.mxu0 %v2933_v0 }
  0x46   :  { %2551 = vmatpush3.msra.mxu1 %v3020_v25  ;;  %2702 = vset.pattern.permute.xlu0 %v2935_v27 }
  0x47   :  { %2566 = vmatprep.subr.mxu1 %v2933_v0  ;;  %2703 = vset.pattern.permute.xlu1 %v2935_v27 }
  0xf3   :  { %v266_v33 = vpop.f32.mrf.mxu1 }
  0xf5   :  { %v2521_v35 = vpop.f32.mrf.mxu1 }
  0xfa   :  { %v168_v37 = vpop.f32.mrf.mxu0 }
  0xfb   :  { %v169_v38 = vadd.f32 %v168_v37, %v88_v34 }
  0xfc   :  { %v170_v39 = vpop.f32.mrf.mxu0  ;;  %v377_v42 = vpop.f32.mrf.mxu1 }
  0xfd   :  { %179 = vst [vmem:[#allocation2 + $0x10] sm:$0xff] %v169_v38  ;;  %v171_v40 = vadd.f32 %v170_v39, %v92_v36  ;;  %v382_v49 = vrot.slane %v377_v42, 2 }
  0xfe   :  { %v174_v41 = vpop.f32.mrf.mxu0  ;;  %v2532_v45 = vpop.f32.mrf.mxu1 }
  0xff   :  { %180 = vst [vmem:[#allocation2] sm:$0xff] %v171_v40  ;;  %v175_v43 = vadd.f32 %v174_v41, %v88_v34 }
 0x100   :  { %v176_v44 = vpop.f32.mrf.mxu0 }
 0x101   :  { %181 = vst [vmem:[#allocation2 + $0x18] sm:$0xff] %v175_v43  ;;  %v177_v46 = vadd.f32 %v176_v44, %v92_v36 }
 0x103   :  { %182 = vst [vmem:[#allocation2 + $0x8] sm:$0xff] %v177_v46 }
 0x104   :  { %v194_v47 = vld [vmem:[#allocation2 + $0x10] sm:$0x3]  ;;  %v452_v43 = vld [vmem:[#allocation2 + $0x10] sm:$0xc] }
 0x105   :  { %v270_v48 = vadd.f32 %v266_v33, %v194_v47 }
 0x107   :  { %2704 = vtanh.f32 %v270_v48  ;;  %v2388_v55 = vmul.f32 -1.442695, %v270_v48 }
 0x10a   :  { %v195_v50 = vld [vmem:[#allocation2 + $0x8] sm:$0xc0]  ;;  %v453_v48 = vld [vmem:[#allocation2 + $0x8] sm:$0x30] }
 0x10b   :  { %v384_v51 = vadd.f32 %v382_v49, %v195_v50 }
 0x10d   :  { %2706 = vtanh.f32 %v384_v51  ;;  %v2389_v56 = vmul.f32 -1.442695, %v384_v51 }
 0x10e   :  { %2708 = vpow2.f32 %v2388_v55 }
 0x10f   :  { %2710 = vpow2.f32 %v2389_v56  ;;  %v2390_v56 = vld [vmem:[%s3545_s1 + $0x2] sm:$0x3] }
 0x114   :  { %v2705_v52 = vpop.eup %2704 }
 0x115   :  { %280 = vrot.lane.b32.xlu0 %v2705_v52, %s2936_s3 }
 0x11a   :  { %v2707_v53 = vpop.eup %2706 }
 0x11b   :  { %394 = vrot.lane.b32.xlu0 %v2707_v53, %s2936_s3  ;;  %v2709_v57 = vpop.eup %2708 }
 0x11c   :  { %v274_v58 = vadd.f32 1.0, %v2709_v57  ;;  %v2711_v59 = vpop.eup %2710 }
 0x11d   :  { %v388_v60 = vadd.f32 1.0, %v2711_v59 }
 0x11e   :  { %2712 = vrcp.f32 %v274_v58  ;;  %v571_v58 = vsub.f32 1.0, %v2390_v56 }
 0x11f   :  { %297 = vperm.xlu0 %2702, %v191_v54   ;;  %2714 = vrcp.f32 %v388_v60 }
 0x12b   :  { %v2713_v61 = vpop.eup %2712 }
 0x12c   :  { %v2715_v1 = vpop.eup %2714  ;;  %v278_v5 = vmul.f32 0.0, %v2713_v61 }
 0x12d   :  { %v392_v9 = vmul.f32 0.0, %v2715_v1 }
 0x187   :  { %v281_v62 = vpop.permute.xlu0 %280 }
 0x188   :  { %v283_v63 = vmul.f32 %v2713_v61, %v281_v62 }
 0x18a   :  { %285 = vrot.lane.b32.xlu1 %v283_v63, %s2937_s20 }
 0x18d   :  { %v395_v2 = vpop.permute.xlu0 %394 }
 0x18e   :  { %v397_v3 = vmul.f32 %v2715_v1, %v395_v2 }
 0x190   :  { %399 = vrot.lane.b32.xlu1 %v397_v3, %s2937_s20 }
 0x194   :  { %304 = vperm.xlu1 %2703, %v301_v4  }
 0x19a   :  { %v3073_v26 = vpop.permute.xlu0 %297 }
 0x1fc   :  { %v286_v6 = vpop.permute.xlu1 %285 }
 0x1fd   :  { %v3065_v7 = vadd.f32 %v286_v6, %v278_v5 }
 0x1ff   :  { %2716 = vtanh.f32 %v3065_v7 }
 0x202   :  { %v400_v11 = vpop.permute.xlu1 %399 }
 0x203   :  { %v402_v13 = vadd.f32 %v400_v11, %v392_v9  ;;  %v300_v11 = vmul.f32 %v3073_v26, %v3065_v7 }
 0x205   :  { %2718 = vtanh.f32 %v402_v13  ;;  %v415_v33 = vrot.slane %v402_v13, 6 }
 0x20c   :  { %v2717_v14 = vpop.eup %2716 }
 0x20d   :  { %291 = vrot.lane.b32.xlu1 %v2717_v14, %s2936_s3 }
 0x20f   :  { %v305_v20 = vpop.permute.xlu1 %304 }
 0x210   :  { %v3075_v27 = vmul.f32 0.0, %v305_v20 }
 0x211   :  { %411 = vperm.xlu1 %2703, %v2387_v16  }
 0x212   :  { %v2719_v17 = vpop.eup %2718  ;;  %v308_v13 = vadd.f32 %v3075_v27, %v300_v11 }
 0x213   :  { %405 = vrot.lane.b32.xlu0 %v2719_v17, %s2936_s3 }
 0x214   :  { %v541_v14 = vrot.slane %v308_v13, 6 }
 0x217   :  { %423 = vperm.xlu0 %2702, %v420_v18  }
 0x27f   :  { %v292_v21 = vpop.permute.xlu1 %291 }
 0x280   :  { %v294_v23 = vmul.f32 %v2713_v61, %v292_v21 }
 0x282   :  { %v3078_v28 = vmul.f32 %v3073_v26, %v294_v23 }
 0x284   :  { %v3082_v29 = vadd.f32 %v3078_v28, %v3075_v27 }
 0x285   :  { %v406_v30 = vpop.permute.xlu0 %405 }
 0x286   :  { %v408_v31 = vmul.f32 %v2715_v1, %v406_v30  ;;  %455 = vrot.lane.b32.xlu0 %v3082_v29, %s2937_s20 }
 0x288   :  { %v429_v32 = vrot.slane %v408_v31, 6 }
 0x28a   :  { %430 = vrot.lane.b32.xlu1 %v429_v32, %s2937_s20  ;;  %v2391_v32 = vld [vmem:[%s3545_s1 + $0xc] sm:$0x3] }
 0x28b   :  { %v712_v7 = vsub.f32 1.0, %v2391_v32 }
 0x28c   :  { %v412_v35 = vpop.permute.xlu1 %411 }
 0x28e   :  { %416 = vrot.lane.b32.xlu1 %v415_v33, %s2938_s23 }
 0x292   :  { %v424_v34 = vpop.permute.xlu0 %423 }
 0x293   :  { %v426_v38 = vmul.f32 0.0, %v424_v34 }
 0x2f8   :  { %v456_v36 = vpop.permute.xlu0 %455 }
 0x2f9   :  { %2542 = vmatmul.mubr.msk.f32.vlgmr.msra.gmra.mxu0 %vm196_vm2, %v456_v36 }
 0x2fa   :  { %2556 = vmatpush3.msra.mxu0 %v2989_v8  ;;  %2563 = vmatprep.mubr.msk.f32.mxu0 %vm2934_vm0, %v2933_v0 }
 0x2fb   :  { %2557 = vmatprep.subr.mxu0 %v2933_v0 }
 0x2fc   :  { %v431_v37 = vpop.permute.xlu1 %430  ;;  %2558 = vmatpush3.msra.mxu0 %v2992_v10 }
 0x2fd   :  { %v3094_v39 = vmul.f32 %v431_v37, %v412_v35  ;;  %2559 = vmatprep.subr.mxu0 %v2933_v0 }
 0x2fe   :  { %2560 = vmatpush3.msra.mxu0 %v2995_v12 }
 0x2ff   :  { %v3099_v40 = vadd.f32 %v3094_v39, %v426_v38  ;;  %2561 = vmatprep.subr.mxu0 %v2933_v0 }
 0x300   :  { %2562 = vmatpush3.msra.mxu0 %v2999_v15  ;;  %v417_v52 = vpop.permute.xlu1 %416 }
 0x301   :  { %2553 = vmatmul.mubr.msk.f32.vlgmr.msra.gmra.mxu1 %vm196_vm2, %v3099_v40  ;;  %2577 = vmatprep.subr.mxu0 %v2933_v0  ;;  %v419_v53 = vmul.f32 %v417_v52, %v412_v35 }
 0x302   :  { %2567 = vmatpush3.msra.mxu1 %v3004_v19  ;;  %2574 = vmatprep.mubr.msk.f32.mxu1 %vm2934_vm0, %v2933_v0 }
 0x303   :  { %2568 = vmatprep.subr.mxu1 %v2933_v0  ;;  %v3117_v54 = vadd.f32 %v426_v38, %v419_v53 }
 0x304   :  { %2569 = vmatpush3.msra.mxu1 %v3008_v22 }
 0x305   :  { %2570 = vmatprep.subr.mxu1 %v2933_v0  ;;  %v680_v57 = vrot.slane %v3117_v54, 4 }
 0x306   :  { %2571 = vmatpush3.msra.mxu1 %v3015_v24 }
 0x307   :  { %2572 = vmatprep.subr.mxu1 %v2933_v0 }
 0x308   :  { %2573 = vmatpush3.msra.mxu1 %v3020_v25 }
 0x309   :  { %2588 = vmatprep.subr.mxu1 %v2933_v0 }
 0x3b9   :  { %v525_v41 = vpop.f32.mrf.mxu0 }
 0x3ba   :  { %v530_v42 = vrot.slane %v525_v41, 6 }
 0x3bb   :  { %v2543_v44 = vpop.f32.mrf.mxu0 }
 0x3bc   :  { %v532_v45 = vadd.f32 %v530_v42, %v452_v43 }
 0x3be   :  { %2720 = vtanh.f32 %v532_v45  ;;  %v2393_v59 = vmul.f32 -1.442695, %v532_v45 }
 0x3c1   :  { %v664_v46 = vpop.f32.mrf.mxu1 }
 0x3c2   :  { %v669_v47 = vrot.slane %v664_v46, 4 }
 0x3c3   :  { %v2554_v49 = vpop.f32.mrf.mxu1 }
 0x3c4   :  { %v671_v50 = vadd.f32 %v669_v47, %v453_v48 }
 0x3c6   :  { %2722 = vtanh.f32 %v671_v50  ;;  %v2395_v60 = vmul.f32 -1.442695, %v671_v50 }
 0x3c7   :  { %2724 = vpow2.f32 %v2393_v59 }
 0x3c8   :  { %2726 = vpow2.f32 %v2395_v60 }
 0x3cb   :  { %v2721_v51 = vpop.eup %2720 }
 0x3cc   :  { %545 = vrot.lane.b32.xlu0 %v2721_v51, %s2936_s3 }
 0x3d3   :  { %v2723_v55 = vpop.eup %2722 }
 0x3d4   :  { %686 = vrot.lane.b32.xlu1 %v2723_v55, %s2936_s3  ;;  %v2725_v61 = vpop.eup %2724 }
 0x3d5   :  { %v536_v62 = vadd.f32 1.0, %v2725_v61  ;;  %v2727_v63 = vpop.eup %2726 }
 0x3d6   :  { %v675_v1 = vadd.f32 1.0, %v2727_v63  ;;  %v741_v63 = vld [vmem:[#allocation2 + $0x8] sm:$0xc] }
 0x3d7   :  { %2728 = vrcp.f32 %v536_v62 }
 0x3d8   :  { %681 = vrot.lane.b32.xlu1 %v680_v57, %s2937_s20  ;;  %2730 = vrcp.f32 %v675_v1  ;;  %v740_v57 = vld [vmem:[#allocation2 + $0x10] sm:$0x30] }
 0x3dc   :  { %574 = vperm.xlu1 %2703, %v571_v58  }
 0x3e4   :  { %v2729_v2 = vpop.eup %2728 }
 0x3e5   :  { %v2731_v5 = vpop.eup %2730  ;;  %v543_v16 = vmul.f32 %v2729_v2, %v541_v14 }
 0x43e   :  { %v546_v3 = vpop.permute.xlu0 %545 }
 0x43f   :  { %v548_v4 = vmul.f32 %v2729_v2, %v546_v3 }
 0x441   :  { %550 = vrot.lane.b32.xlu0 %v548_v4, %s2937_s20 }
 0x446   :  { %v687_v6 = vpop.permute.xlu1 %686 }
 0x447   :  { %v689_v9 = vmul.f32 %v2731_v5, %v687_v6 }
 0x449   :  { %691 = vrot.lane.b32.xlu0 %v689_v9, %s2937_s20 }
 0x44a   :  { %v682_v20 = vpop.permute.xlu1 %681 }
 0x44b   :  { %v684_v21 = vmul.f32 %v2731_v5, %v682_v20 }
 0x457   :  { %v575_v27 = vpop.permute.xlu1 %574 }
 0x458   :  { %v589_v33 = vmul.f32 %v575_v27, %v3082_v29  ;;  %v577_v29 = vmul.f32 %v575_v27, %v308_v13 }
 0x4b3   :  { %v551_v17 = vpop.permute.xlu0 %550 }
 0x4b4   :  { %v553_v18 = vadd.f32 %v551_v17, %v543_v16 }
 0x4b6   :  { %2732 = vtanh.f32 %v553_v18  ;;  %v566_v34 = vrot.slane %v553_v18, 2 }
 0x4bb   :  { %v692_v23 = vpop.permute.xlu0 %691 }
 0x4bc   :  { %v694_v30 = vadd.f32 %v692_v23, %v684_v21 }
 0x4be   :  { %2734 = vtanh.f32 %v694_v30  ;;  %v707_v35 = vrot.slane %v694_v30, 4 }
 0x4c3   :  { %v2733_v31 = vpop.eup %2732 }
 0x4c4   :  { %556 = vrot.lane.b32.xlu0 %v2733_v31, %s2936_s3 }
 0x4c8   :  { %562 = vperm.xlu0 %2702, %v2390_v56  }
 0x4cb   :  { %v2735_v26 = vpop.eup %2734 }
 0x4cc   :  { %715 = vperm.xlu0 %2702, %v712_v7   ;;  %697 = vrot.lane.b32.xlu1 %v2735_v26, %s2936_s3 }
 0x4d0   :  { %703 = vperm.xlu1 %2703, %v2391_v32   ;;  %591 = vrot.lane.b32.xlu0 %v589_v33, %s2937_s20 }
 0x4d4   :  { %567 = vrot.lane.b32.xlu0 %v566_v34, %s2938_s23 }
 0x4d8   :  { %708 = vrot.lane.b32.xlu0 %v707_v35, %s2938_s23 }
 0x536   :  { %v557_v36 = vpop.permute.xlu0 %556 }
 0x537   :  { %v559_v37 = vmul.f32 %v2729_v2, %v557_v36 }
 0x539   :  { %v584_v38 = vrot.slane %v559_v37, 2 }
 0x53b   :  { %585 = vrot.lane.b32.xlu1 %v584_v38, %s2937_s20 }
 0x53e   :  { %v698_v41 = vpop.permute.xlu1 %697 }
 0x53f   :  { %v700_v42 = vmul.f32 %v2731_v5, %v698_v41 }
 0x541   :  { %v721_v43 = vrot.slane %v700_v42, 4 }
 0x543   :  { %722 = vrot.lane.b32.xlu1 %v721_v43, %s2937_s20  ;;  %v563_v44 = vpop.permute.xlu0 %562 }
 0x547   :  { %579 = vrot.lane.b32.xlu1 %v577_v29, %s2938_s23  ;;  %v716_v45 = vpop.permute.xlu0 %715 }
 0x548   :  { %v726_v52 = vmul.f32 %v716_v45, %v3099_v40  ;;  %v718_v13 = vmul.f32 %v716_v45, %v3117_v54  ;;  %v2396_v45 = vld [vmem:[%s3545_s1 + $0x4] sm:$0x3] }
 0x54b   :  { %v704_v46 = vpop.permute.xlu1 %703  ;;  %v592_v49 = vpop.permute.xlu0 %591 }
 0x54f   :  { %v568_v60 = vpop.permute.xlu0 %567 }
 0x550   :  { %v570_v5 = vmul.f32 %v568_v60, %v563_v44 }
 0x553   :  { %v709_v3 = vpop.permute.xlu0 %708 }
 0x554   :  { %v711_v6 = vmul.f32 %v709_v3, %v704_v46 }
 0x556   :  { %v3179_v14 = vadd.f32 %v718_v13, %v711_v6 }
 0x558   :  { %v960_v17 = vrot.slane %v3179_v14, 6 }
 0x5ad   :  { %v586_v47 = vpop.permute.xlu1 %585 }
 0x5ae   :  { %v588_v48 = vmul.f32 %v586_v47, %v563_v44 }
 0x5b0   :  { %v3142_v50 = vadd.f32 %v592_v49, %v588_v48  ;;  %729 = vst.msk [vmem:[#allocation9 + $0x2] sm:$0x3] %vm439_vm3, %v588_v48  ;;  %v859_v48 = vsub.f32 1.0, %v2396_v45 }
 0x5b2   :  { %2564 = vmatmul.mubr.msk.f32.vlgmr.msra.gmra.mxu0 %vm196_vm2, %v3142_v50 }
 0x5b3   :  { %2578 = vmatpush3.msra.mxu0 %v2989_v8  ;;  %2585 = vmatprep.mubr.msk.f32.mxu0 %vm2934_vm0, %v2933_v0 }
 0x5b4   :  { %2579 = vmatprep.subr.mxu0 %v2933_v0 }
 0x5b5   :  { %v723_v51 = vpop.permute.xlu1 %722  ;;  %2580 = vmatpush3.msra.mxu0 %v2992_v10 }
 0x5b6   :  { %v3153_v53 = vmul.f32 %v723_v51, %v704_v46  ;;  %2581 = vmatprep.subr.mxu0 %v2933_v0  ;;  %v2397_v46 = vld [vmem:[%s3545_s1 + $0xa] sm:$0x3] }
 0x5b7   :  { %2582 = vmatpush3.msra.mxu0 %v2995_v12  ;;  %v992_v49 = vsub.f32 1.0, %v2397_v46 }
 0x5b8   :  { %v3158_v55 = vadd.f32 %v726_v52, %v3153_v53  ;;  %2583 = vmatprep.subr.mxu0 %v2933_v0 }
 0x5b9   :  { %2584 = vmatpush3.msra.mxu0 %v2999_v15  ;;  %v580_v4 = vpop.permute.xlu1 %579 }
 0x5ba   :  { %2575 = vmatmul.mubr.msk.f32.vlgmr.msra.gmra.mxu1 %vm196_vm2, %v3158_v55  ;;  %2599 = vmatprep.subr.mxu0 %v2933_v0  ;;  %v3175_v9 = vadd.f32 %v580_v4, %v570_v5 }
 0x5bb   :  { %2589 = vmatpush3.msra.mxu1 %v3004_v19  ;;  %2596 = vmatprep.mubr.msk.f32.mxu1 %vm2934_vm0, %v2933_v0 }
 0x5bc   :  { %2590 = vmatprep.subr.mxu1 %v2933_v0  ;;  %v827_v16 = vrot.slane %v3175_v9, 4 }
 0x5bd   :  { %2591 = vmatpush3.msra.mxu1 %v3008_v22 }
 0x5be   :  { %2592 = vmatprep.subr.mxu1 %v2933_v0 }
 0x5bf   :  { %2593 = vmatpush3.msra.mxu1 %v3015_v24 }
 0x5c0   :  { %2594 = vmatprep.subr.mxu1 %v2933_v0 }
 0x5c1   :  { %2595 = vmatpush3.msra.mxu1 %v3020_v25 }
 0x5c2   :  { %2610 = vmatprep.subr.mxu1 %v2933_v0 }
 0x672   :  { %v811_v40 = vpop.f32.mrf.mxu0 }
 0x673   :  { %v816_v56 = vrot.slane %v811_v40, 4 }
 0x674   :  { %v2565_v58 = vpop.f32.mrf.mxu0 }
 0x675   :  { %v818_v59 = vadd.f32 %v816_v56, %v740_v57 }
 0x677   :  { %2736 = vtanh.f32 %v818_v59  ;;  %v2399_v20 = vmul.f32 -1.442695, %v818_v59 }
 0x67a   :  { %v944_v61 = vpop.f32.mrf.mxu1 }
 0x67b   :  { %v949_v62 = vrot.slane %v944_v61, 6 }
 0x67c   :  { %v2576_v1 = vpop.f32.mrf.mxu1 }
 0x67d   :  { %v951_v2 = vadd.f32 %v949_v62, %v741_v63 }
 0x67f   :  { %2738 = vtanh.f32 %v951_v2  ;;  %v2401_v21 = vmul.f32 -1.442695, %v951_v2 }
 0x680   :  { %2740 = vpow2.f32 %v2399_v20 }
 0x681   :  { %2742 = vpow2.f32 %v2401_v21  ;;  %v1021_v21 = vld [vmem:[#allocation2 + $0x8] sm:$0x3] }
 0x684   :  { %v2737_v11 = vpop.eup %2736 }
 0x685   :  { %833 = vrot.lane.b32.xlu1 %v2737_v11, %s2936_s3 }
 0x689   :  { %828 = vrot.lane.b32.xlu1 %v827_v16, %s2937_s20 }
 0x68c   :  { %v2739_v18 = vpop.eup %2738 }
 0x68d   :  { %966 = vrot.lane.b32.xlu0 %v2739_v18, %s2936_s3  ;;  %961 = vrot.lane.b32.xlu1 %v960_v17, %s2937_s20  ;;  %v2741_v54 = vpop.eup %2740  ;;  %v1020_v17 = vld [vmem:[#allocation2 + $0x10] sm:$0xc0] }
 0x68e   :  { %v822_v23 = vadd.f32 1.0, %v2741_v54  ;;  %v2743_v30 = vpop.eup %2742 }
 0x68f   :  { %v955_v31 = vadd.f32 1.0, %v2743_v30 }
 0x690   :  { %2744 = vrcp.f32 %v822_v23 }
 0x691   :  { %2746 = vrcp.f32 %v955_v31 }
 0x69d   :  { %v2745_v32 = vpop.eup %2744 }
 0x69e   :  { %v2747_v27 = vpop.eup %2746 }
 0x6f7   :  { %v834_v7 = vpop.permute.xlu1 %833 }
 0x6f8   :  { %v836_v26 = vmul.f32 %v2745_v32, %v834_v7 }
 0x6fa   :  { %838 = vrot.lane.b32.xlu0 %v836_v26, %s2937_s20 }
 0x6fb   :  { %v829_v35 = vpop.permute.xlu1 %828 }
 0x6fc   :  { %v831_v36 = vmul.f32 %v2745_v32, %v829_v35 }
 0x6ff   :  { %v967_v33 = vpop.permute.xlu0 %966  ;;  %v962_v41 = vpop.permute.xlu1 %961 }
 0x700   :  { %v969_v34 = vmul.f32 %v2747_v27, %v967_v33  ;;  %v964_v42 = vmul.f32 %v2747_v27, %v962_v41 }
 0x702   :  { %971 = vrot.lane.b32.xlu0 %v969_v34, %s2937_s20 }
 0x76c   :  { %v839_v37 = vpop.permute.xlu0 %838 }
 0x76d   :  { %v841_v38 = vadd.f32 %v839_v37, %v831_v36 }
 0x76f   :  { %2748 = vtanh.f32 %v841_v38  ;;  %v854_v56 = vrot.slane %v841_v38, 4  ;;  %v2403_v38 = vld [vmem:[%s3545_s1 + $0x8] sm:$0x3] }
 0x774   :  { %v972_v43 = vpop.permute.xlu0 %971 }
 0x775   :  { %v974_v29 = vadd.f32 %v972_v43, %v964_v42 }
 0x777   :  { %2750 = vtanh.f32 %v974_v29  ;;  %v987_v60 = vrot.slane %v974_v29, 2 }
 0x77c   :  { %v2749_v44 = vpop.eup %2748 }
 0x77d   :  { %844 = vrot.lane.b32.xlu1 %v2749_v44, %s2936_s3 }
 0x781   :  { %850 = vperm.xlu1 %2703, %v2396_v45  }
 0x784   :  { %v2751_v47 = vpop.eup %2750 }
 0x785   :  { %983 = vperm.xlu1 %2703, %v2397_v46   ;;  %977 = vrot.lane.b32.xlu0 %v2751_v47, %s2936_s3 }
 0x789   :  { %862 = vperm.xlu0 %2702, %v859_v48  }
 0x78d   :  { %995 = vperm.xlu0 %2702, %v992_v49  }
 0x7ef   :  { %v845_v51 = vpop.permute.xlu1 %844 }
 0x7f0   :  { %v847_v52 = vmul.f32 %v2745_v32, %v845_v51 }
 0x7f2   :  { %v868_v40 = vrot.slane %v847_v52, 4 }
 0x7f4   :  { %869 = vrot.lane.b32.xlu1 %v868_v40, %s2937_s20 }
 0x7f7   :  { %v978_v57 = vpop.permute.xlu0 %977 }
 0x7f8   :  { %v980_v58 = vmul.f32 %v2747_v27, %v978_v57  ;;  %855 = vrot.lane.b32.xlu1 %v854_v56, %s2938_s23 }
 0x7fa   :  { %v1001_v59 = vrot.slane %v980_v58, 2 }
 0x7fc   :  { %1002 = vrot.lane.b32.xlu0 %v1001_v59, %s2937_s20  ;;  %v851_v61 = vpop.permute.xlu1 %850 }
 0x800   :  { %988 = vrot.lane.b32.xlu0 %v987_v60, %s2938_s23  ;;  %v984_v62 = vpop.permute.xlu1 %983 }
 0x804   :  { %v863_v63 = vpop.permute.xlu0 %862 }
 0x805   :  { %v873_v2 = vmul.f32 %v863_v63, %v3142_v50  ;;  %v865_v7 = vmul.f32 %v863_v63, %v3175_v9  ;;  %v1263_v9 = vsub.f32 1.0, %v2403_v38 }
 0x808   :  { %v996_v5 = vpop.permute.xlu0 %995 }
 0x809   :  { %v1006_v50 = vmul.f32 %v996_v5, %v3158_v55  ;;  %v998_v36 = vmul.f32 %v996_v5, %v3179_v14 }
 0x866   :  { %v870_v1 = vpop.permute.xlu1 %869 }
 0x867   :  { %v872_v3 = vmul.f32 %v870_v1, %v851_v61 }
 0x869   :  { %v3201_v4 = vadd.f32 %v873_v2, %v872_v3  ;;  %1009 = vst.msk [vmem:[#allocation9 + $0x4] sm:$0x3] %vm439_vm3, %v872_v3  ;;  %v2402_v2 = vld [vmem:[%s3545_s1 + $0x6] sm:$0x3] }
 0x86a   :  { %v856_v30 = vpop.permute.xlu1 %855  ;;  %v1139_v5 = vsub.f32 1.0, %v2402_v2 }
 0x86b   :  { %2586 = vmatmul.mubr.msk.f32.vlgmr.msra.gmra.mxu0 %vm196_vm2, %v3201_v4  ;;  %v858_v32 = vmul.f32 %v856_v30, %v851_v61 }
 0x86c   :  { %2600 = vmatpush3.msra.mxu0 %v2989_v8  ;;  %2607 = vmatprep.mubr.msk.f32.mxu0 %vm2934_vm0, %v2933_v0 }
 0x86d   :  { %2601 = vmatprep.subr.mxu0 %v2933_v0  ;;  %v3235_v26 = vadd.f32 %v865_v7, %v858_v32 }
 0x86e   :  { %v1003_v6 = vpop.permute.xlu0 %1002  ;;  %2602 = vmatpush3.msra.mxu0 %v2992_v10 }
 0x86f   :  { %v3212_v11 = vmul.f32 %v1003_v6, %v984_v62  ;;  %2603 = vmatprep.subr.mxu0 %v2933_v0  ;;  %v1107_v35 = vrot.slane %v3235_v26, 2 }
 0x870   :  { %2604 = vmatpush3.msra.mxu0 %v2995_v12 }
 0x871   :  { %v3217_v13 = vadd.f32 %v1006_v50, %v3212_v11  ;;  %2605 = vmatprep.subr.mxu0 %v2933_v0 }
 0x872   :  { %2606 = vmatpush3.msra.mxu0 %v2999_v15  ;;  %v989_v33 = vpop.permute.xlu0 %988 }
 0x873   :  { %2597 = vmatmul.mubr.msk.f32.vlgmr.msra.gmra.mxu1 %vm196_vm2, %v3217_v13  ;;  %2621 = vmatprep.subr.mxu0 %v2933_v0  ;;  %v991_v34 = vmul.f32 %v989_v33, %v984_v62 }
 0x874   :  { %2611 = vmatpush3.msra.mxu1 %v3004_v19  ;;  %2618 = vmatprep.mubr.msk.f32.mxu1 %vm2934_vm0, %v2933_v0 }
 0x875   :  { %2612 = vmatprep.subr.mxu1 %v2933_v0  ;;  %v3244_v41 = vadd.f32 %v998_v36, %v991_v34 }
 0x876   :  { %2613 = vmatpush3.msra.mxu1 %v3008_v22 }
 0x877   :  { %2614 = vmatprep.subr.mxu1 %v2933_v0 }
 0x878   :  { %2615 = vmatpush3.msra.mxu1 %v3015_v24 }
 0x879   :  { %2616 = vmatprep.subr.mxu1 %v2933_v0 }
 0x87a   :  { %2617 = vmatpush3.msra.mxu1 %v3020_v25 }
 0x87b   :  { %2632 = vmatprep.subr.mxu1 %v2933_v0 }
 0x92b   :  { %v1091_v55 = vpop.f32.mrf.mxu0 }
 0x92c   :  { %v1096_v16 = vrot.slane %v1091_v55, 2 }
 0x92d   :  { %v2587_v18 = vpop.f32.mrf.mxu0 }
 0x92e   :  { %v1098_v20 = vadd.f32 %v1096_v16, %v1020_v17 }
 0x930   :  { %2752 = vtanh.f32 %v1098_v20  ;;  %v2405_v42 = vmul.f32 -1.442695, %v1098_v20 }
 0x933   :  { %v1224_v54 = vpop.f32.mrf.mxu1 }
 0x934   :  { %v1228_v23 = vadd.f32 %v1224_v54, %v1021_v21 }
 0x935   :  { %v2598_v31 = vpop.f32.mrf.mxu1 }
 0x936   :  { %2754 = vtanh.f32 %v1228_v23  ;;  %v2407_v43 = vmul.f32 -1.442695, %v1228_v23 }
 0x937   :  { %2756 = vpow2.f32 %v2405_v42 }
 0x938   :  { %2758 = vpow2.f32 %v2407_v43 }
 0x93d   :  { %v2753_v27 = vpop.eup %2752 }
 0x93e   :  { %1113 = vrot.lane.b32.xlu1 %v2753_v27, %s2936_s3 }
 0x942   :  { %1108 = vrot.lane.b32.xlu1 %v1107_v35, %s2937_s20 }
 0x943   :  { %v2755_v37 = vpop.eup %2754 }
 0x944   :  { %1242 = vrot.lane.b32.xlu0 %v2755_v37, %s2936_s3  ;;  %v2757_v14 = vpop.eup %2756 }
 0x945   :  { %v1102_v29 = vadd.f32 1.0, %v2757_v14  ;;  %v2759_v44 = vpop.eup %2758 }
 0x946   :  { %1237 = vrot.lane.b32.xlu1 %v3244_v41, %s2937_s20  ;;  %v1232_v45 = vadd.f32 1.0, %v2759_v44 }
 0x947   :  { %2760 = vrcp.f32 %v1102_v29 }
 0x948   :  { %2762 = vrcp.f32 %v1232_v45 }
 0x94a   :  { %1266 = vperm.xlu1 %2703, %v1263_v9  }
 0x954   :  { %v2761_v46 = vpop.eup %2760 }
 0x955   :  { %v2763_v49 = vpop.eup %2762 }
 0x9b0   :  { %v1114_v47 = vpop.permute.xlu1 %1113 }
 0x9b1   :  { %v1116_v48 = vmul.f32 %v2761_v46, %v1114_v47 }
 0x9b3   :  { %1118 = vrot.lane.b32.xlu0 %v1116_v48, %s2937_s20 }
 0x9b4   :  { %v1109_v40 = vpop.permute.xlu1 %1108 }
 0x9b5   :  { %v1111_v56 = vmul.f32 %v2761_v46, %v1109_v40 }
 0x9b6   :  { %v1243_v51 = vpop.permute.xlu0 %1242 }
 0x9b7   :  { %v1245_v52 = vmul.f32 %v2763_v49, %v1243_v51 }
 0x9b8   :  { %v1238_v59 = vpop.permute.xlu1 %1237 }
 0x9b9   :  { %1247 = vrot.lane.b32.xlu0 %v1245_v52, %s2937_s20  ;;  %v1240_v60 = vmul.f32 %v2763_v49, %v1238_v59 }
 0x9bd   :  { %1259 = vperm.xlu0 %2702, %v2403_v38  }
 0x9c5   :  { %v3254_v1 = vpop.permute.xlu1 %1266 }
 0x9c6   :  { %v1276_v3 = vmul.f32 %v3254_v1, %v3217_v13 }
 0xa25   :  { %v1119_v57 = vpop.permute.xlu0 %1118 }
 0xa26   :  { %v1121_v58 = vadd.f32 %v1119_v57, %v1111_v56  ;;  %v2409_v57 = vld [vmem:[%s3545_s1 + $0x6] sm:$0x3] }
 0xa28   :  { %2764 = vtanh.f32 %v1121_v58  ;;  %v1134_v20 = vrot.slane %v1121_v58, 6  ;;  %v1538_v58 = vsub.f32 1.0, %v2409_v57 }
 0xa2b   :  { %v1248_v61 = vpop.permute.xlu0 %1247 }
 0xa2c   :  { %v3251_v62 = vadd.f32 %v1248_v61, %v1240_v60 }
 0xa2e   :  { %2766 = vtanh.f32 %v3251_v62 }
 0xa35   :  { %v2765_v63 = vpop.eup %2764 }
 0xa36   :  { %1124 = vrot.lane.b32.xlu1 %v2765_v63, %s2936_s3 }
 0xa38   :  { %v3264_v16 = vpop.permute.xlu0 %1259 }
 0xa39   :  { %v1262_v60 = vmul.f32 %v3264_v16, %v3251_v62 }
 0xa3a   :  { %1278 = vrot.lane.b32.xlu1 %v1276_v3, %s2938_s23 }
 0xa3b   :  { %v2767_v6 = vpop.eup %2766 }
 0xa3c   :  { %1253 = vrot.lane.b32.xlu0 %v2767_v6, %s2936_s3 }
 0xa3e   :  { %1142 = vperm.xlu1 %2703, %v1139_v5  }
 0xa40   :  { %1130 = vperm.xlu0 %2702, %v2402_v2  }
 0xaa8   :  { %v1125_v50 = vpop.permute.xlu1 %1124 }
 0xaa9   :  { %v1127_v55 = vmul.f32 %v2761_v46, %v1125_v50 }
 0xaab   :  { %v1148_v17 = vrot.slane %v1127_v55, 6 }
 0xaac   :  { %v1279_v54 = vpop.permute.xlu1 %1278 }
 0xaad   :  { %1149 = vrot.lane.b32.xlu0 %v1148_v17, %s2937_s20 }
 0xaae   :  { %v1254_v18 = vpop.permute.xlu0 %1253 }
 0xaaf   :  { %v1256_v21 = vmul.f32 %v2763_v49, %v1254_v18 }
 0xab1   :  { %v3268_v13 = vmul.f32 %v3264_v16, %v1256_v21  ;;  %1135 = vrot.lane.b32.xlu0 %v1134_v20, %s2938_s23 }
 0xab3   :  { %v3272_v23 = vadd.f32 %v1279_v54, %v3268_v13 }
 0xab5   :  { %1422 = vrot.lane.b32.xlu1 %v3272_v23, %s2937_s20 }
 0xab9   :  { %v1143_v31 = vpop.permute.xlu1 %1142 }
 0xaba   :  { %v1153_v7 = vmul.f32 %v1143_v31, %v3201_v4  ;;  %v1293_v4 = vld [vmem:[#allocation2] sm:$0xc0]  ;;  %v1145_v42 = vmul.f32 %v1143_v31, %v3235_v26  ;;  %v2408_v26 = vld [vmem:[%s3545_s1 + $0x8] sm:$0x3] }
 0xabb   :  { %v1131_v30 = vpop.permute.xlu0 %1130  ;;  %v1402_v51 = vsub.f32 1.0, %v2408_v26 }
 0xb1f   :  { %v1150_v32 = vpop.permute.xlu0 %1149 }
 0xb20   :  { %v1152_v27 = vmul.f32 %v1150_v32, %v1131_v30 }
 0xb22   :  { %v3277_v33 = vadd.f32 %v1153_v7, %v1152_v27  ;;  %1283 = vst.msk [vmem:[#allocation9 + $0x6] sm:$0x3] %vm439_vm3, %v1152_v27 }
 0xb23   :  { %v1136_v37 = vpop.permute.xlu0 %1135 }
 0xb24   :  { %2608 = vmatmul.mubr.msk.f32.vlgmr.msra.gmra.mxu0 %vm196_vm2, %v3277_v33  ;;  %v1138_v38 = vmul.f32 %v1136_v37, %v1131_v30  ;;  %v3365_v37 = vld [vmem:[#allocation6] sm:$0xff] }
 0xb25   :  { %2622 = vmatpush3.msra.mxu0 %v2989_v8  ;;  %2629 = vmatprep.mubr.msk.f32.mxu0 %vm2934_vm0, %v2933_v0  ;;  %v1292_v8 = vld [vmem:[#allocation2 + $0x18] sm:$0x3] }
 0xb26   :  { %2623 = vmatprep.subr.mxu0 %v2933_v0  ;;  %v3309_v43 = vadd.f32 %v1145_v42, %v1138_v38  ;;  %v3374_v38 = vld [vmem:[#allocation8 + $0x18] sm:$0xff]  ;;  %v3384_v42 = vld [vmem:[#allocation8 + $0x8] sm:$0xff] }
 0xb27   :  { %v1423_v34 = vpop.permute.xlu1 %1422  ;;  %2624 = vmatpush3.msra.mxu0 %v2992_v10 }
 0xb28   :  { %2619 = vmatmul.mubr.msk.f32.vlgmr.msra.gmra.mxu1 %vm196_vm2, %v1423_v34  ;;  %2625 = vmatprep.subr.mxu0 %v2933_v0 }
 0xb29   :  { %2626 = vmatpush3.msra.mxu0 %v2995_v12  ;;  %2633 = vmatpush3.msra.mxu1 %v3004_v19 }
 0xb2a   :  { %2627 = vmatprep.subr.mxu0 %v2933_v0  ;;  %2634 = vmatprep.subr.mxu1 %v2933_v0 }
 0xb2b   :  { %2628 = vmatpush3.msra.mxu0 %v2999_v15  ;;  %2635 = vmatpush3.msra.mxu1 %v3008_v22 }
 0xb2c   :  { %2636 = vmatprep.subr.mxu1 %v2933_v0  ;;  %2640 = vmatprep.mubr.msk.f32.mxu1 %vm2934_vm0, %v2933_v0 }
 0xb2d   :  { %2637 = vmatpush3.msra.mxu1 %v3015_v24  ;;  %2643 = vmatprep.subr.mxu0 %v2933_v0 }
 0xb2e   :  { %2638 = vmatprep.subr.mxu1 %v2933_v0 }
 0xb2f   :  { %2639 = vmatpush3.msra.mxu1 %v3020_v25  ;;  %v1269_v25 = vmul.f32 %v3254_v1, %v3244_v41 }
 0xb30   :  { %2654 = vmatprep.subr.mxu1 %v2933_v0 }
 0xbe4   :  { %v1363_v10 = vpop.f32.mrf.mxu0 }
 0xbe5   :  { %v1367_v12 = vadd.f32 %v1363_v10, %v1292_v8 }
 0xbe6   :  { %v2609_v15 = vpop.f32.mrf.mxu0 }
 0xbe7   :  { %2768 = vtanh.f32 %v1367_v12  ;;  %v2411_v14 = vmul.f32 -1.442695, %v1367_v12 }
 0xbe8   :  { %v1492_v19 = vpop.f32.mrf.mxu1 }
 0xbe9   :  { %v1497_v22 = vrot.slane %v1492_v19, 2 }
 0xbea   :  { %v2620_v35 = vpop.f32.mrf.mxu1 }
 0xbeb   :  { %v1499_v36 = vadd.f32 %v1497_v22, %v1293_v4  ;;  %v3349_v22 = vld [vmem:[#allocation6 + $0x18] sm:$0xff]  ;;  %v3359_v35 = vld [vmem:[#allocation6 + $0x8] sm:$0xff] }
 0xbed   :  { %2770 = vtanh.f32 %v1499_v36  ;;  %v2413_v29 = vmul.f32 -1.442695, %v1499_v36 }
 0xbee   :  { %2772 = vpow2.f32 %v2411_v14  ;;  %v3388_v14 = vld [vmem:[#allocation8] sm:$0xff] }
 0xbef   :  { %2774 = vpow2.f32 %v2413_v29 }
 0xbf4   :  { %v2769_v24 = vpop.eup %2768 }
 0xbf5   :  { %1381 = vrot.lane.b32.xlu1 %v2769_v24, %s2936_s3 }
 0xbf9   :  { %1271 = vrot.lane.b32.xlu1 %v1269_v25, %s2937_s20 }
 0xbfa   :  { %v2771_v9 = vpop.eup %2770 }
 0xbfb   :  { %1512 = vrot.lane.b32.xlu0 %v2771_v9, %s2936_s3  ;;  %v2773_v44 = vpop.eup %2772  ;;  %v3380_v9 = vld [vmem:[#allocation8 + $0x10] sm:$0xff] }
 0xbfc   :  { %v1371_v45 = vadd.f32 1.0, %v2773_v44  ;;  %v2775_v41 = vpop.eup %2774 }
 0xbfd   :  { %v1503_v46 = vadd.f32 1.0, %v2775_v41 }
 0xbfe   :  { %2776 = vrcp.f32 %v1371_v45  ;;  %v1574_v45 = vld [vmem:[#allocation2 + $0x18] sm:$0xc] }
 0xbff   :  { %1376 = vrot.lane.b32.xlu0 %v3309_v43, %s2937_s20  ;;  %2778 = vrcp.f32 %v1503_v46 }
 0xc0b   :  { %v2777_v47 = vpop.eup %2776 }
 0xc0c   :  { %v2779_v52 = vpop.eup %2778 }
 0xc67   :  { %v1382_v48 = vpop.permute.xlu1 %1381 }
 0xc68   :  { %v1384_v49 = vmul.f32 %v2777_v47, %v1382_v48 }
 0xc6a   :  { %1386 = vrot.lane.b32.xlu1 %v1384_v49, %s2937_s20 }
 0xc6b   :  { %v1272_v59 = vpop.permute.xlu1 %1271 }
 0xc6c   :  { %v1274_v63 = vadd.f32 %v1272_v59, %v1262_v60  ;;  %v2414_v60 = vld [vmem:[%s3545_s1 + $0xa] sm:$0x3] }
 0xc6d   :  { %v1513_v40 = vpop.permute.xlu0 %1512 }
 0xc6e   :  { %v1515_v56 = vmul.f32 %v2779_v52, %v1513_v40  ;;  %1405 = vperm.xlu1 %2703, %v1402_v51   ;;  %v1508_v3 = vrot.slane %v1274_v63, 2 }
 0xc70   :  { %1517 = vrot.lane.b32.xlu0 %v1515_v56, %s2937_s20  ;;  %v1510_v6 = vmul.f32 %v2779_v52, %v1508_v3 }
 0xc71   :  { %v1377_v61 = vpop.permute.xlu0 %1376 }
 0xc72   :  { %v1379_v1 = vmul.f32 %v2777_v47, %v1377_v61 }
 0xc74   :  { %1398 = vperm.xlu0 %2702, %v2408_v26   ;;  %v1575_v26 = vld [vmem:[#allocation2] sm:$0x30] }
 0xc78   :  { %1541 = vperm.xlu0 %2702, %v1538_v58  }
 0xcdc   :  { %v1387_v2 = vpop.permute.xlu1 %1386 }
 0xcdd   :  { %v3323_v5 = vadd.f32 %v1387_v2, %v1379_v1 }
 0xcdf   :  { %2780 = vtanh.f32 %v3323_v5 }
 0xce2   :  { %v1518_v50 = vpop.permute.xlu0 %1517 }
 0xce3   :  { %v1520_v55 = vadd.f32 %v1518_v50, %v1510_v6 }
 0xce5   :  { %2782 = vtanh.f32 %v1520_v55  ;;  %v1533_v34 = vrot.slane %v1520_v55, 6 }
 0xce9   :  { %v3326_v17 = vpop.permute.xlu1 %1405 }
 0xcea   :  { %v1415_v18 = vmul.f32 %v3326_v17, %v3277_v33  ;;  %v1408_v58 = vmul.f32 %v3326_v17, %v3309_v43 }
 0xcec   :  { %v2781_v20 = vpop.eup %2780  ;;  %1417 = vrot.lane.b32.xlu0 %v1415_v18, %s2938_s23 }
 0xced   :  { %1392 = vrot.lane.b32.xlu1 %v2781_v20, %s2936_s3 }
 0xcef   :  { %v3333_v16 = vpop.permute.xlu0 %1398 }
 0xcf2   :  { %v2783_v62 = vpop.eup %2782 }
 0xcf3   :  { %1523 = vrot.lane.b32.xlu1 %v2783_v62, %s2936_s3  ;;  %v1542_v21 = vpop.permute.xlu0 %1541 }
 0xcf4   :  { %v1556_v10 = vmul.f32 %v1542_v21, %v3272_v23  ;;  %v1544_v12 = vmul.f32 %v1542_v21, %v1274_v63  ;;  %v3355_v23 = vld [vmem:[#allocation6 + $0x10] sm:$0xff]  ;;  %v1693_v63 = vsub.f32 1.0, %v2414_v60 }
 0xcf7   :  { %1529 = vperm.xlu1 %2703, %v2409_v57  }
 0xd5e   :  { %v1418_v32 = vpop.permute.xlu0 %1417 }
 0xd5f   :  { %v1393_v54 = vpop.permute.xlu1 %1392 }
 0xd60   :  { %v1395_v30 = vmul.f32 %v2777_v47, %v1393_v54 }
 0xd62   :  { %v3336_v31 = vmul.f32 %v3333_v16, %v1395_v30 }
 0xd64   :  { %v3339_v7 = vadd.f32 %v1418_v32, %v3336_v31  ;;  %v1401_v32 = vmul.f32 %v3333_v16, %v3323_v5 }
 0xd65   :  { %v1524_v27 = vpop.permute.xlu1 %1523 }
 0xd66   :  { %v1526_v33 = vmul.f32 %v2779_v52, %v1524_v27  ;;  %1577 = vrot.lane.b32.xlu1 %v3339_v7, %s2937_s20 }
 0xd68   :  { %v1551_v8 = vrot.slane %v1526_v33, 6 }
 0xd6a   :  { %1534 = vrot.lane.b32.xlu1 %v1533_v34, %s2938_s23  ;;  %1552 = vrot.lane.b32.xlu0 %v1551_v8, %s2937_s20 }
 0xd6e   :  { %1558 = vrot.lane.b32.xlu0 %v1556_v10, %s2937_s20 }
 0xd72   :  { %1546 = vrot.lane.b32.xlu0 %v1544_v12, %s2938_s23  ;;  %v1530_v15 = vpop.permute.xlu1 %1529 }
 0xdd8   :  { %v1578_v19 = vpop.permute.xlu1 %1577 }
 0xdd9   :  { %2630 = vmatmul.mubr.msk.f32.vlgmr.msra.gmra.mxu0 %vm196_vm2, %v1578_v19 }
 0xdda   :  { %2644 = vmatpush3.msra.mxu0 %v3349_v22  ;;  %2651 = vmatprep.mubr.msk.f32.mxu0 %vm2934_vm0, %v2933_v0 }
 0xddb   :  { %2645 = vmatprep.subr.mxu0 %v2933_v0 }
 0xddc   :  { %v1553_v4 = vpop.permute.xlu0 %1552  ;;  %2646 = vmatpush3.msra.mxu0 %v3355_v23  ;;  %v1535_v52 = vpop.permute.xlu1 %1534 }
 0xddd   :  { %2647 = vmatprep.subr.mxu0 %v2933_v0  ;;  %v3362_v36 = vmul.f32 %v1553_v4, %v1530_v15  ;;  %v1537_v57 = vmul.f32 %v1535_v52, %v1530_v15 }
 0xdde   :  { %2648 = vmatpush3.msra.mxu0 %v3359_v35 }
 0xddf   :  { %2649 = vmatprep.subr.mxu0 %v2933_v0 }
 0xde0   :  { %v1559_v24 = vpop.permute.xlu0 %1558  ;;  %2650 = vmatpush3.msra.mxu0 %v3365_v37 }
 0xde1   :  { %v3369_v25 = vadd.f32 %v1559_v24, %v3362_v36  ;;  %2665 = vmatprep.subr.mxu0 %v2933_v0 }
 0xde3   :  { %2641 = vmatmul.mubr.msk.f32.vlgmr.msra.gmra.mxu1 %vm196_vm2, %v3369_v25 }
 0xde4   :  { %2655 = vmatpush3.msra.mxu1 %v3374_v38  ;;  %2662 = vmatprep.mubr.msk.f32.mxu1 %vm2934_vm0, %v2933_v0  ;;  %v1547_v56 = vpop.permute.xlu0 %1546 }
 0xde5   :  { %2656 = vmatprep.subr.mxu1 %v2933_v0  ;;  %v3395_v59 = vadd.f32 %v1547_v56, %v1537_v57 }
 0xde6   :  { %2657 = vmatpush3.msra.mxu1 %v3380_v9 }
 0xde7   :  { %2658 = vmatprep.subr.mxu1 %v2933_v0  ;;  %v1802_v61 = vrot.slane %v3395_v59, 4 }
 0xde8   :  { %2659 = vmatpush3.msra.mxu1 %v3384_v42 }
 0xde9   :  { %2660 = vmatprep.subr.mxu1 %v2933_v0 }
 0xdea   :  { %2661 = vmatpush3.msra.mxu1 %v3388_v14 }
 0xdeb   :  { %2676 = vmatprep.subr.mxu1 %v2933_v0 }
 0xe99   :  { %v1647_v29 = vpop.f32.mrf.mxu0 }
 0xe9a   :  { %v1652_v44 = vrot.slane %v1647_v29, 6  ;;  %v2415_v29 = vld [vmem:[%s3545_s1 + $0x4] sm:$0x3] }
 0xe9b   :  { %v2631_v41 = vpop.f32.mrf.mxu0  ;;  %v1834_v5 = vsub.f32 1.0, %v2415_v29 }
 0xe9c   :  { %v1654_v46 = vadd.f32 %v1652_v44, %v1574_v45 }
 0xe9e   :  { %2784 = vtanh.f32 %v1654_v46  ;;  %v2417_v2 = vmul.f32 -1.442695, %v1654_v46 }
 0xea3   :  { %v1786_v47 = vpop.f32.mrf.mxu1 }
 0xea4   :  { %v1791_v48 = vrot.slane %v1786_v47, 4 }
 0xea5   :  { %v2642_v49 = vpop.f32.mrf.mxu1 }
 0xea6   :  { %v1793_v51 = vadd.f32 %v1791_v48, %v1575_v26 }
 0xea8   :  { %2786 = vtanh.f32 %v1793_v51  ;;  %v2419_v43 = vmul.f32 -1.442695, %v1793_v51 }
 0xea9   :  { %2788 = vpow2.f32 %v2417_v2 }
 0xeaa   :  { %2790 = vpow2.f32 %v2419_v43 }
 0xeab   :  { %v2785_v40 = vpop.eup %2784 }
 0xeac   :  { %1667 = vrot.lane.b32.xlu1 %v2785_v40, %s2936_s3 }
 0xeb0   :  { %1410 = vrot.lane.b32.xlu1 %v1408_v58, %s2937_s20 }
 0xeb4   :  { %1803 = vrot.lane.b32.xlu1 %v1802_v61, %s2937_s20 }
 0xeb5   :  { %v2787_v1 = vpop.eup %2786 }
 0xeb6   :  { %1808 = vrot.lane.b32.xlu0 %v2787_v1, %s2936_s3  ;;  %v2789_v3 = vpop.eup %2788 }
 0xeb7   :  { %v1658_v6 = vadd.f32 1.0, %v2789_v3  ;;  %v2791_v50 = vpop.eup %2790 }
 0xeb8   :  { %1696 = vperm.xlu1 %2703, %v1693_v63   ;;  %v1797_v55 = vadd.f32 1.0, %v2791_v50 }
 0xeb9   :  { %2792 = vrcp.f32 %v1658_v6 }
 0xeba   :  { %2794 = vrcp.f32 %v1797_v55  ;;  %v1859_v55 = vld [vmem:[#allocation2] sm:$0xc] }
 0xec6   :  { %v2793_v17 = vpop.eup %2792 }
 0xec7   :  { %v2795_v62 = vpop.eup %2794 }
 0xf1e   :  { %v1668_v18 = vpop.permute.xlu1 %1667 }
 0xf1f   :  { %v1670_v20 = vmul.f32 %v2793_v17, %v1668_v18 }
 0xf21   :  { %1672 = vrot.lane.b32.xlu0 %v1670_v20, %s2937_s20 }
 0xf22   :  { %v1411_v30 = vpop.permute.xlu1 %1410 }
 0xf23   :  { %v1413_v27 = vadd.f32 %v1411_v30, %v1401_v32 }
 0xf25   :  { %v1663_v33 = vrot.slane %v1413_v27, 6 }
 0xf26   :  { %v1804_v12 = vpop.permute.xlu1 %1803 }
 0xf27   :  { %v1665_v34 = vmul.f32 %v2793_v17, %v1663_v33  ;;  %v1806_v15 = vmul.f32 %v2795_v62, %v1804_v12 }
 0xf28   :  { %v1809_v21 = vpop.permute.xlu0 %1808 }
 0xf29   :  { %v1811_v54 = vmul.f32 %v2795_v62, %v1809_v21 }
 0xf2b   :  { %1813 = vrot.lane.b32.xlu0 %v1811_v54, %s2937_s20 }
 0xf33   :  { %v1697_v16 = vpop.permute.xlu1 %1696 }
 0xf34   :  { %v1711_v45 = vmul.f32 %v1697_v16, %v3339_v7  ;;  %v1699_v7 = vmul.f32 %v1697_v16, %v1413_v27 }
 0xf93   :  { %v1673_v8 = vpop.permute.xlu0 %1672 }
 0xf94   :  { %v1675_v10 = vadd.f32 %v1673_v8, %v1665_v34 }
 0xf96   :  { %2796 = vtanh.f32 %v1675_v10  ;;  %v1688_v41 = vrot.slane %v1675_v10, 2 }
 0xf9d   :  { %v1814_v19 = vpop.permute.xlu0 %1813 }
 0xf9e   :  { %v1816_v4 = vadd.f32 %v1814_v19, %v1806_v15 }
 0xfa0   :  { %2798 = vtanh.f32 %v1816_v4  ;;  %v1829_v46 = vrot.slane %v1816_v4, 4 }
 0xfa3   :  { %v2797_v24 = vpop.eup %2796 }
 0xfa4   :  { %1678 = vrot.lane.b32.xlu0 %v2797_v24, %s2936_s3 }
 0xfa8   :  { %1684 = vperm.xlu0 %2702, %v2414_v60  }
 0xfac   :  { %1837 = vperm.xlu0 %2702, %v1834_v5  }
 0xfad   :  { %v2799_v44 = vpop.eup %2798 }
 0xfae   :  { %1819 = vrot.lane.b32.xlu1 %v2799_v44, %s2936_s3 }
 0xfb0   :  { %1713 = vrot.lane.b32.xlu0 %v1711_v45, %s2937_s20 }
 0xfb2   :  { %1825 = vperm.xlu1 %2703, %v2415_v29  }
 0xfb4   :  { %1689 = vrot.lane.b32.xlu0 %v1688_v41, %s2938_s23 }
 0xfb8   :  { %1830 = vrot.lane.b32.xlu0 %v1829_v46, %s2938_s23 }
0x1016   :  { %v1679_v47 = vpop.permute.xlu0 %1678 }
0x1017   :  { %v1681_v48 = vmul.f32 %v2793_v17, %v1679_v47 }
0x1019   :  { %v1706_v26 = vrot.slane %v1681_v48, 2 }
0x101b   :  { %1707 = vrot.lane.b32.xlu1 %v1706_v26, %s2937_s20 }
0x1020   :  { %v1820_v49 = vpop.permute.xlu1 %1819 }
0x1021   :  { %v1822_v51 = vmul.f32 %v2795_v62, %v1820_v49 }
0x1023   :  { %v1843_v52 = vrot.slane %v1822_v51, 4  ;;  %v1685_v40 = vpop.permute.xlu0 %1684  ;;  %v2420_v51 = vld [vmem:[%s3545_s1 + $0xc] sm:$0x3] }
0x1025   :  { %1844 = vrot.lane.b32.xlu1 %v1843_v52, %s2937_s20  ;;  %v2421_v52 = vld [vmem:[%s3545_s1 + $0x2] sm:$0x3] }
0x1027   :  { %v1838_v56 = vpop.permute.xlu0 %1837 }
0x1028   :  { %v1848_v2 = vmul.f32 %v1838_v56, %v3369_v25  ;;  %v1840_v21 = vmul.f32 %v1838_v56, %v3395_v59  ;;  %v2110_v56 = vsub.f32 1.0, %v2421_v52 }
0x1029   :  { %1701 = vrot.lane.b32.xlu1 %v1699_v7, %s2938_s23 }
0x102b   :  { %v1714_v61 = vpop.permute.xlu0 %1713 }
0x102d   :  { %v1826_v57 = vpop.permute.xlu1 %1825 }
0x102f   :  { %v1690_v3 = vpop.permute.xlu0 %1689 }
0x1030   :  { %v1692_v62 = vmul.f32 %v1690_v3, %v1685_v40 }
0x1033   :  { %v1831_v18 = vpop.permute.xlu0 %1830 }
0x108d   :  { %v1708_v58 = vpop.permute.xlu1 %1707 }
0x108e   :  { %v3420_v60 = vmul.f32 %v1708_v58, %v1685_v40  ;;  %v1977_v40 = vsub.f32 1.0, %v2420_v51 }
0x1090   :  { %v3423_v63 = vadd.f32 %v1714_v61, %v3420_v60 }
0x1092   :  { %2652 = vmatmul.mubr.msk.f32.vlgmr.msra.gmra.mxu0 %vm196_vm2, %v3423_v63 }
0x1093   :  { %2666 = vmatpush3.msra.mxu0 %v3349_v22  ;;  %2673 = vmatprep.mubr.msk.f32.mxu0 %vm2934_vm0, %v2933_v0 }
0x1094   :  { %2667 = vmatprep.subr.mxu0 %v2933_v0 }
0x1095   :  { %2668 = vmatpush3.msra.mxu0 %v3355_v23 }
0x1096   :  { %2669 = vmatprep.subr.mxu0 %v2933_v0 }
0x1097   :  { %v1845_v1 = vpop.permute.xlu1 %1844  ;;  %2670 = vmatpush3.msra.mxu0 %v3359_v35 }
0x1098   :  { %v3435_v43 = vmul.f32 %v1845_v1, %v1826_v57  ;;  %2671 = vmatprep.subr.mxu0 %v2933_v0 }
0x1099   :  { %2672 = vmatpush3.msra.mxu0 %v3365_v37  ;;  %v1858_v37 = vld [vmem:[#allocation2 + $0x18] sm:$0x30] }
0x109a   :  { %v3440_v22 = vadd.f32 %v1848_v2, %v3435_v43 }
0x109b   :  { %v1702_v20 = vpop.permute.xlu1 %1701 }
0x109c   :  { %2663 = vmatmul.mubr.msk.f32.vlgmr.msra.gmra.mxu1 %vm196_vm2, %v3440_v22 }
0x109d   :  { %2677 = vmatpush3.msra.mxu1 %v3374_v38  ;;  %2684 = vmatprep.mubr.msk.f32.mxu1 %vm2934_vm0, %v2933_v0 }
0x109e   :  { %2678 = vmatprep.subr.mxu1 %v2933_v0 }
0x109f   :  { %2679 = vmatpush3.msra.mxu1 %v3380_v9 }
0x10a0   :  { %2680 = vmatprep.subr.mxu1 %v2933_v0 }
0x10a1   :  { %2681 = vmatpush3.msra.mxu1 %v3384_v42  ;;  %v1833_v42 = vmul.f32 %v1831_v18, %v1826_v57 }
0x10a2   :  { %2682 = vmatprep.subr.mxu1 %v2933_v0  ;;  %v3453_v0 = vadd.f32 %v1702_v20, %v1692_v62 }
0x10a3   :  { %2683 = vmatpush3.msra.mxu1 %v3388_v14  ;;  %v3457_v54 = vadd.f32 %v1840_v21, %v1833_v42 }
0x10a4   :  { %v1945_v30 = vrot.slane %v3453_v0, 4 }
0x10a5   :  { %v2078_v32 = vrot.slane %v3457_v54, 6 }
0x1152   :  { %v1929_v23 = vpop.f32.mrf.mxu0 }
0x1153   :  { %v1934_v35 = vrot.slane %v1929_v23, 4 }
0x1154   :  { %v2653_v25 = vpop.f32.mrf.mxu0 }
0x1155   :  { %v1936_v38 = vadd.f32 %v1934_v35, %v1858_v37 }
0x1157   :  { %2800 = vtanh.f32 %v1936_v38  ;;  %v2423_v33 = vmul.f32 -1.442695, %v1936_v38 }
0x115c   :  { %v2062_v6 = vpop.f32.mrf.mxu1 }
0x115d   :  { %v2067_v50 = vrot.slane %v2062_v6, 6 }
0x115e   :  { %v2664_v17 = vpop.f32.mrf.mxu1 }
0x115f   :  { %v2069_v9 = vadd.f32 %v2067_v50, %v1859_v55 }
0x1161   :  { %2802 = vtanh.f32 %v2069_v9  ;;  %v2425_v34 = vmul.f32 -1.442695, %v2069_v9 }
0x1162   :  { %2804 = vpow2.f32 %v2423_v33  ;;  %v2135_v33 = vld [vmem:[#allocation2] sm:$0x3] }
0x1163   :  { %2806 = vpow2.f32 %v2425_v34 }
0x1164   :  { %v2801_v14 = vpop.eup %2800 }
0x1165   :  { %1951 = vrot.lane.b32.xlu1 %v2801_v14, %s2936_s3 }
0x1169   :  { %1946 = vrot.lane.b32.xlu1 %v1945_v30, %s2937_s20  ;;  %v2134_v30 = vld [vmem:[#allocation2 + $0x18] sm:$0xc0] }
0x116d   :  { %2079 = vrot.lane.b32.xlu1 %v2078_v32, %s2937_s20 }
0x116e   :  { %v2803_v27 = vpop.eup %2802 }
0x116f   :  { %2084 = vrot.lane.b32.xlu0 %v2803_v27, %s2936_s3  ;;  %v2805_v59 = vpop.eup %2804 }
0x1170   :  { %v1940_v8 = vadd.f32 1.0, %v2805_v59  ;;  %v2807_v10 = vpop.eup %2806 }
0x1171   :  { %v2073_v12 = vadd.f32 1.0, %v2807_v10 }
0x1172   :  { %2808 = vrcp.f32 %v1940_v8 }
0x1173   :  { %2810 = vrcp.f32 %v2073_v12 }
0x117f   :  { %v2809_v15 = vpop.eup %2808 }
0x1180   :  { %v2811_v24 = vpop.eup %2810 }
0x11d7   :  { %v1952_v19 = vpop.permute.xlu1 %1951 }
0x11d8   :  { %v1954_v4 = vmul.f32 %v2809_v15, %v1952_v19 }
0x11da   :  { %1956 = vrot.lane.b32.xlu0 %v1954_v4, %s2937_s20 }
0x11db   :  { %v1947_v16 = vpop.permute.xlu1 %1946 }
0x11dc   :  { %v1949_v44 = vmul.f32 %v2809_v15, %v1947_v16 }
0x11df   :  { %v2080_v46 = vpop.permute.xlu1 %2079 }
0x11e0   :  { %v2082_v47 = vmul.f32 %v2811_v24, %v2080_v46 }
0x11e1   :  { %v2085_v29 = vpop.permute.xlu0 %2084 }
0x11e2   :  { %v2087_v5 = vmul.f32 %v2811_v24, %v2085_v29 }
0x11e4   :  { %2089 = vrot.lane.b32.xlu0 %v2087_v5, %s2937_s20 }
0x124c   :  { %v1957_v45 = vpop.permute.xlu0 %1956 }
0x124d   :  { %v1959_v41 = vadd.f32 %v1957_v45, %v1949_v44 }
0x124f   :  { %2812 = vtanh.f32 %v1959_v41  ;;  %v1972_v1 = vrot.slane %v1959_v41, 4 }
0x1256   :  { %v2090_v48 = vpop.permute.xlu0 %2089 }
0x1257   :  { %v2092_v26 = vadd.f32 %v2090_v48, %v2082_v47 }
0x1259   :  { %2814 = vtanh.f32 %v2092_v26  ;;  %v2105_v37 = vrot.slane %v2092_v26, 2 }
0x125c   :  { %v2813_v49 = vpop.eup %2812 }
0x125d   :  { %1962 = vrot.lane.b32.xlu1 %v2813_v49, %s2936_s3 }
0x1261   :  { %1968 = vperm.xlu1 %2703, %v2420_v51  }
0x1265   :  { %2101 = vperm.xlu1 %2703, %v2421_v52  }
0x1266   :  { %v2815_v7 = vpop.eup %2814 }
0x1267   :  { %2095 = vrot.lane.b32.xlu0 %v2815_v7, %s2936_s3 }
0x126b   :  { %1980 = vperm.xlu0 %2702, %v1977_v40  }
0x126f   :  { %2113 = vperm.xlu0 %2702, %v2110_v56  }
0x12cf   :  { %v1963_v57 = vpop.permute.xlu1 %1962 }
0x12d0   :  { %v1965_v58 = vmul.f32 %v2809_v15, %v1963_v57 }
0x12d2   :  { %v1986_v61 = vrot.slane %v1965_v58, 4 }
0x12d4   :  { %1987 = vrot.lane.b32.xlu1 %v1986_v61, %s2937_s20 }
0x12d8   :  { %1973 = vrot.lane.b32.xlu1 %v1972_v1, %s2938_s23 }
0x12d9   :  { %v2096_v2 = vpop.permute.xlu0 %2095 }
0x12da   :  { %v2098_v23 = vmul.f32 %v2811_v24, %v2096_v2 }
0x12dc   :  { %v2119_v35 = vrot.slane %v2098_v23, 2  ;;  %v1969_v25 = vpop.permute.xlu1 %1968 }
0x12de   :  { %2120 = vrot.lane.b32.xlu0 %v2119_v35, %s2937_s20 }
0x12e0   :  { %v2102_v38 = vpop.permute.xlu1 %2101 }
0x12e2   :  { %2106 = vrot.lane.b32.xlu0 %v2105_v37, %s2938_s23  ;;  %v2426_v37 = vld [vmem:[%s3545_s1 + $0xe] sm:$0x3] }
0x12e6   :  { %v1981_v3 = vpop.permute.xlu0 %1980 }
0x12e7   :  { %v1991_v50 = vmul.f32 %v1981_v3, %v3423_v63 }
0x12ea   :  { %v2114_v9 = vpop.permute.xlu0 %2113 }
0x12eb   :  { %v2124_v20 = vmul.f32 %v2114_v9, %v3440_v22  ;;  %v1983_v22 = vmul.f32 %v1981_v3, %v3453_v0  ;;  %v2116_v29 = vmul.f32 %v2114_v9, %v3457_v54  ;;  %v2133_v0 = vld [vmem:[%s3545_s1] sm:$0x3]  ;;  %s2939_s1 = smov [#allocation9]  }
0x1346   :  { %v1988_v6 = vpop.permute.xlu1 %1987 }
0x1347   :  { %v3479_v55 = vmul.f32 %v1988_v6, %v1969_v25 }
0x1349   :  { %v1992_v17 = vadd.f32 %v1991_v50, %v3479_v55 }
0x134a   :  { %v1974_v27 = vpop.permute.xlu1 %1973 }
0x134b   :  { %2674 = vmatmul.mubr.msk.f32.vlgmr.msra.gmra.mxu0 %vm196_vm2, %v1992_v17  ;;  %v1976_v10 = vmul.f32 %v1974_v27, %v1969_v25 }
0x134d   :  { %v1984_v12 = vadd.f32 %v1983_v22, %v1976_v10 }
0x134f   :  { %v2221_v4 = vrot.slane %v1984_v12, 2 }
0x1350   :  { %v2121_v18 = vpop.permute.xlu0 %2120 }
0x1351   :  { %v3484_v62 = vmul.f32 %v2121_v18, %v2102_v38 }
0x1353   :  { %v2125_v42 = vadd.f32 %v2124_v20, %v3484_v62 }
0x1354   :  { %v2107_v19 = vpop.permute.xlu0 %2106 }
0x1355   :  { %2685 = vmatmul.mubr.msk.f32.vlgmr.msra.gmra.mxu1 %vm196_vm2, %v2125_v42  ;;  %v2109_v24 = vmul.f32 %v2107_v19, %v2102_v38 }
0x1357   :  { %v2117_v5 = vadd.f32 %v2116_v29, %v2109_v24 }
0x140b   :  { %v2205_v14 = vpop.f32.mrf.mxu0 }
0x140c   :  { %v2210_v21 = vrot.slane %v2205_v14, 2 }
0x140d   :  { %v2675_v63 = vpop.f32.mrf.mxu0 }
0x140e   :  { %v2212_v32 = vadd.f32 %v2210_v21, %v2134_v30 }
0x1410   :  { %2816 = vtanh.f32 %v2212_v32  ;;  %v2428_v44 = vmul.f32 -1.442695, %v2212_v32 }
0x1415   :  { %v2322_v34 = vpop.f32.mrf.mxu1 }
0x1416   :  { %v2326_v59 = vadd.f32 %v2322_v34, %v2135_v33 }
0x1417   :  { %v2686_v8 = vpop.f32.mrf.mxu1 }
0x1418   :  { %2818 = vtanh.f32 %v2326_v59  ;;  %v2430_v45 = vmul.f32 -1.442695, %v2326_v59 }
0x1419   :  { %2820 = vpow2.f32 %v2428_v44 }
0x141a   :  { %2822 = vpow2.f32 %v2430_v45 }
0x141d   :  { %v2817_v15 = vpop.eup %2816 }
0x141e   :  { %2227 = vrot.lane.b32.xlu1 %v2817_v15, %s2936_s3 }
0x1422   :  { %2222 = vrot.lane.b32.xlu1 %v2221_v4, %s2937_s20 }
0x1425   :  { %v2819_v16 = vpop.eup %2818 }
0x1426   :  { %2340 = vrot.lane.b32.xlu0 %v2819_v16, %s2936_s3  ;;  %2335 = vrot.lane.b32.xlu1 %v2117_v5, %s2937_s20  ;;  %v2821_v41 = vpop.eup %2820 }
0x1427   :  { %v2216_v46 = vadd.f32 1.0, %v2821_v41  ;;  %v2823_v54 = vpop.eup %2822 }
0x1428   :  { %v2330_v47 = vadd.f32 1.0, %v2823_v54 }
0x1429   :  { %2824 = vrcp.f32 %v2216_v46 }
0x142a   :  { %2357 = vperm.xlu1 %2703, %v2133_v0   ;;  %2826 = vrcp.f32 %v2330_v47 }
0x1436   :  { %v2825_v48 = vpop.eup %2824 }
0x1437   :  { %v2827_v51 = vpop.eup %2826 }
0x1490   :  { %v2228_v26 = vpop.permute.xlu1 %2227 }
0x1491   :  { %v2230_v49 = vmul.f32 %v2825_v48, %v2228_v26 }
0x1493   :  { %2232 = vrot.lane.b32.xlu0 %v2230_v49, %s2937_s20 }
0x1494   :  { %v2223_v40 = vpop.permute.xlu1 %2222 }
0x1495   :  { %v2225_v56 = vmul.f32 %v2825_v48, %v2223_v40 }
0x1498   :  { %v2341_v52 = vpop.permute.xlu0 %2340  ;;  %v2336_v61 = vpop.permute.xlu1 %2335 }
0x1499   :  { %v2343_v7 = vmul.f32 %v2827_v51, %v2341_v52  ;;  %v2338_v1 = vmul.f32 %v2827_v51, %v2336_v61 }
0x149b   :  { %2345 = vrot.lane.b32.xlu0 %v2343_v7, %s2937_s20 }
0x14a5   :  { %v2358_v38 = vpop.permute.xlu1 %2357 }
0x1505   :  { %v2233_v57 = vpop.permute.xlu0 %2232 }
0x1506   :  { %v2235_v58 = vadd.f32 %v2233_v57, %v2225_v56 }
0x1508   :  { %2828 = vtanh.f32 %v2235_v58 }
0x150d   :  { %v2346_v2 = vpop.permute.xlu0 %2345 }
0x150e   :  { %v2348_v23 = vadd.f32 %v2346_v2, %v2338_v1 }
0x1510   :  { %2830 = vtanh.f32 %v2348_v23 }
0x1515   :  { %v2829_v35 = vpop.eup %2828 }
0x1516   :  { %2238 = vrot.lane.b32.xlu0 %v2829_v35, %s2936_s3 }
0x151a   :  { %2244 = vperm.xlu0 %2702, %v2426_v37  }
0x151d   :  { %v2831_v25 = vpop.eup %2830 }
0x151e   :  { %436 = vrot.lane.b32.xlu0 %v3078_v28, %s2937_s20  ;;  %2351 = vrot.lane.b32.xlu1 %v2831_v25, %s2936_s3 }
0x1522   :  { %731 = vrot.lane.b32.xlu0 %v3153_v53, %s2937_s20  ;;  %442 = vrot.lane.b32.xlu1 %v3094_v39, %s2937_s20 }
0x1526   :  { %1285 = vrot.lane.b32.xlu0 %v3268_v13, %s2936_s3  ;;  %1011 = vrot.lane.b32.xlu1 %v3212_v11, %s2937_s20 }
0x152a   :  { %1568 = vrot.lane.b32.xlu0 %v3362_v36, %s2937_s20  ;;  %1563 = vrot.lane.b32.xlu1 %v3336_v31, %s2937_s20 }
0x152e   :  { %2128 = vrot.lane.b32.xlu0 %v3484_v62, %s2937_s20  ;;  %1852 = vrot.lane.b32.xlu1 %v3435_v43, %s2937_s20 }
0x1588   :  { %v2239_v28 = vpop.permute.xlu0 %2238 }
0x1589   :  { %v2241_v39 = vmul.f32 %v2825_v48, %v2239_v28 }
0x158b   :  { %v2248_v53 = vrot.slane %v2241_v39, 6 }
0x158d   :  { %2249 = vrot.lane.b32.xlu1 %v2248_v53, %s2937_s20 }
0x1590   :  { %v2352_v13 = vpop.permute.xlu1 %2351 }
0x1591   :  { %v2354_v11 = vmul.f32 %v2827_v51, %v2352_v13 }
0x1593   :  { %v2360_v3 = vmul.f32 %v2358_v38, %v2354_v11 }
0x1594   :  { %v443_v36 = vpop.permute.xlu1 %442 }
0x1595   :  { %447 = vst.msk [vmem:[#allocation9 + $0xe] sm:$0x3] %vm446_vm4, %v443_v36  ;;  %v2245_v31 = vpop.permute.xlu0 %2244  ;;  %2363 = vrot.lane.b32.xlu1 %v2360_v3, %s2936_s3  ;;  %s2372_s3 = sshll.u32 %s2939_s1, 4  ;;  %s2373_s3 = int_to_ptr.vmem [resolvable:$true] %s2372_s3 }
0x1596   :  { %s2900_s25 = scalar_lea.vmem %s2373_s3, 256  ;;  %p2905_p2 = scmp.lt.s32.totalorder %s2373_s3, %s2373_s3 }
0x1597   :  { %p2901_p1 = scmp.ne.s32.totalorder %s2373_s3, %s2900_s25  ;;  %p2906_p3 = scmp.lt.s32.totalorder %s2900_s25, %s2900_s25 }
0x1598   :  { %v1012_v6 = vpop.permute.xlu1 %1011 }
0x1599   :  { %1015 = vst.msk [vmem:[#allocation9 + $0xa] sm:$0x3] %vm446_vm4, %v1012_v6  ;;  %v437_v43 = vpop.permute.xlu0 %436  ;;  %p2907_p4 = por %p2906_p3, %p2905_p2 }
0x159a   :  { %1850 = vst.msk [vmem:[#allocation9 + $0xa] sm:$0x3] %vm439_vm3, %v3420_v60  ;;  %440 = vst.msk [vmem:[#allocation9] sm:$0x3] %vm439_vm3, %v437_v43 }
0x159b   :  { %p2908_p5 = pnand %p2907_p4, %p2901_p1 }
0x159c   :  { %v1564_v50 = vpop.permute.xlu1 %1563 }
0x159d   :  { %v732_v17 = vpop.permute.xlu0 %731 }
0x159e   :  { %735 = vst.msk [vmem:[#allocation9 + $0xc] sm:$0x3] %vm446_vm4, %v732_v17 }
0x159f   :  { %2126 = vst.msk [vmem:[#allocation9 + $0xc] sm:$0x3] %vm439_vm3, %v3479_v55 }
0x15a0   :  { %v1853_v9 = vpop.permute.xlu1 %1852 }
0x15a1   :  { %1855 = vst.msk [vmem:[#allocation9 + $0x4] sm:$0x3] %vm446_vm4, %v1853_v9  ;;  %v1286_v18 = vpop.permute.xlu0 %1285 }
0x15a2   :  { %1289 = vst.msk [vmem:[#allocation9 + $0x8] sm:$0x3] %vm446_vm4, %v1286_v18 }
0x15a3   :  { %1566 = vst.msk [vmem:[#allocation9 + $0x8] sm:$0x3] %vm439_vm3, %v1564_v50 }
0x15a5   :  { %v1569_v20 = vpop.permute.xlu0 %1568 }
0x15a6   :  { %1571 = vst.msk [vmem:[#allocation9 + $0x6] sm:$0x3] %vm446_vm4, %v1569_v20 }
0x15a9   :  { %v2129_v60 = vpop.permute.xlu0 %2128 }
0x15aa   :  { %2131 = vst.msk [vmem:[#allocation9 + $0x2] sm:$0x3] %vm446_vm4, %v2129_v60 }
0x15ff   :  { %v2250_v62 = vpop.permute.xlu1 %2249 }
0x1600   :  { %v2252_v42 = vmul.f32 %v2250_v62, %v2245_v31 }
0x1602   :  { %2361 = vst.msk [vmem:[#allocation9 + $0xe] sm:$0x3] %vm439_vm3, %v2252_v42 }
0x1607   :  { %v2364_v55 = vpop.permute.xlu1 %2363 }
0x1608   :  { %2366 = vst.msk [vmem:[#allocation9] sm:$0x3] %vm446_vm4, %v2364_v55 }
0x1609   :  { %2911 = shalt.err (!%p2908_p5)
}
0x160a   :  { %s2940_s26 = smov 2  }
0x160b   :  { %2378 = dma.vmem_to_hbm [thread:$0]  %s2373_s3, 256, %s3550_s6, [#allocation5], %s2937_s20, %s2937_s20, %s2940_s26  }
0x160c   :  { %2924 = dma.done.wait [#allocation5], 256  }
0x160d   :  { %2925 = vsyncadd [#allocation5], 4294967040 }
0x160e   :  { %2382 = vsyncpa [#allocation4], 1 }
0x160f   :  { %2383 = vsyncpa [#allocation7], 1 }
0x1610   :  { %2384 = vsyncpa [#allocation5], 1 }

</bundles_post_ra>
